<compile_context>
chip_gen: v7x
topology: tpu7x:2x2x1
jax: 0.10.0
libtpu: 0.0.40
codegen_flags: <defaults>
</compile_context>

<pallas_src>
import jax
import jax.numpy as jnp
import numpy as np
from jax import lax
from jax.experimental import pallas as pl
from jax.experimental.pallas import tpu as pltpu


def _dft_matrices(n, dtype):
    """Forward ortho-normalized DFT matrix (real, imag) of size (n, n)."""
    j = np.arange(n)
    ang = -2.0 * np.pi * np.outer(j, j) / n
    scale = 1.0 / np.sqrt(n)
    return (jnp.asarray(np.cos(ang) * scale, dtype),
            jnp.asarray(np.sin(ang) * scale, dtype))


def _device_kind():
    try:
        return jax.devices()[0].device_kind.lower()
    except Exception:
        return ""


def _vmem_capacity_bytes():
    try:
        cap = int(pltpu.get_tpu_info().vmem_capacity_bytes)
        if cap > 0:
            return cap
    except Exception:
        pass
    return 64 * 1024 * 1024          # conservative fallback: v7x per-TC VMEM


def _pick_batch_block(n, requested, budget, est_fn, target_steps):
    """Largest divisor of n that fits the VMEM budget, is <= requested and
    (when possible) leaves >= target_steps grid steps."""
    requested = max(1, int(requested))
    divisors = [b for b in range(1, n + 1) if n % b == 0]
    fitting = [b for b in divisors if est_fn(b) <= budget] or [1]
    candidates = [b for b in fitting if b <= requested] or [min(fitting)]
    for min_steps in (target_steps, 2, 1):
        ok = [b for b in candidates if n // b >= min_steps]
        if ok:
            return max(ok)
    return max(candidates)


def _make_kernel(B, nx, ny, dc_weight, use_gauss, mm_dtype):
    """DC-in-k-space kernel for a block of B images (B, 2, nx, ny)."""
    f32 = jnp.float32
    prec = lax.Precision.HIGHEST if mm_dtype == jnp.float32 else None

    def dot(a, b):
        return jnp.dot(a.astype(mm_dtype), b.astype(mm_dtype),
                       preferred_element_type=f32, precision=prec)

    def cplx_right(vr, vi, fr, fi, fcomb, sign):
        # (vr + i*vi) @ (fr + sign*i*fi);  fcomb = fr + sign*fi (Gauss only)
        if use_gauss:
            q1, q2, q3 = dot(vr, fr), dot(vi, fi), dot(vr + vi, fcomb)
            if sign > 0:
                return q1 - q2, q3 - q1 - q2
            return q1 + q2, q3 - q1 + q2
        q1, q2 = dot(vr, fr), dot(vi, fi)
        q3, q4 = dot(vr, fi), dot(vi, fr)
        if sign > 0:
            return q1 - q2, q3 + q4
        return q1 + q2, q4 - q3

    def cplx_left(fr, fi, fcomb, vr, vi, sign):
        # (fr + sign*i*fi) @ (vr + i*vi);  fcomb = fr + sign*fi (Gauss only)
        if use_gauss:
            p1, p2, p3 = dot(fr, vr), dot(fi, vi), dot(fcomb, vr + vi)
            if sign > 0:
                return p1 - p2, p3 - p1 - p2
            return p1 + p2, p3 - p1 + p2
        p1, p2 = dot(fr, vr), dot(fi, vi)
        p3, p4 = dot(fr, vi), dot(fi, vr)
        if sign > 0:
            return p1 - p2, p3 + p4
        return p1 + p2, p3 - p4

    def kernel(x_ref, k0_ref, m_ref, fxr_ref, fxi_ref, fyr_ref, fyi_ref,
               o_ref, gr_scr, gi_scr):
        fxr, fxi = fxr_ref[...], fxi_ref[...]
        fyr, fyi = fyr_ref[...], fyi_ref[...]
        if use_gauss:
            fxs, fxd = fxr + fxi, fxr - fxi     # Fx / conj(Fx) Gauss matrices
            fys, fyd = fyr + fyi, fyr - fyi     # Fy / conj(Fy) Gauss matrices
        else:
            fxs = fxd = fys = fyd = None

        # Row-stacked views of the whole block (free: trailing dim unchanged).
        xr = x_ref[:, 0].reshape(B * nx, ny)
        xi = x_ref[:, 1].reshape(B * nx, ny)

        # ---- forward 2-D ortho DFT, right factor: T = X @ Fy ----------------
        # One big matmul over the row-stacked (B*nx, ny) operand.
        tr, ti = cplx_right(xr, xi, fyr, fyi, fys, +1)

        # ---- per image: left DFT factor, data consistency, inverse left -----
        for b in range(B):
            rows = slice(b * nx, (b + 1) * nx)

            # K_b = Fx @ T_b
            kr, ki = cplx_left(fxr, fxi, fxs, tr[rows], ti[rows], +1)

            # out = K + w * m * (K0 - K)   (weight folded into the mask)
            m = m_ref[b, 0].astype(f32)
            if dc_weight != 1.0:                       # static Python branch
                m = m * dc_weight
            k0r = k0_ref[b, 0].astype(f32)
            k0i = k0_ref[b, 1].astype(f32)
            outr = kr + m * (k0r - kr)
            outi = ki + m * (k0i - ki)

            # G_b = conj(Fx) @ out_b   (conjugation folded into the combine)
            gr, gi = cplx_left(fxr, fxi, fxd, outr, outi, -1)
            gr_scr[rows, :] = gr
            gi_scr[rows, :] = gi

        # ---- inverse right factor: x_res = G @ conj(Fy) ---------------------
        zr, zi = cplx_right(gr_scr[...], gi_scr[...], fyr, fyi, fyd, -1)

        # Two whole-channel, full-extent (lane-dense) stores.
        o_ref[:, 0] = zr.reshape(B, nx, ny).astype(o_ref.dtype)
        o_ref[:, 1] = zi.reshape(B, nx, ny).astype(o_ref.dtype)

    return kernel


def data_consistency_in_kspace(x, k0, mask, noise_lvl=None, batch_block=8,
                               use_bf16=False, use_gauss=None):
    """x, k0: (n, 2, nx, ny); mask: (n,2,nx,ny) | (n,1,nx,ny) | (n,nx,ny).
    Returns the DC-corrected image stack (n, 2, nx, ny) float32."""
    n, c, nx, ny = x.shape
    assert c == 2, "channel dim must be 2 (real, imag)"

    kind = _device_kind()
    if use_gauss is None:
        # Gauss 3M wins on v5-class MXUs; plain 4M keeps VPU/ld-st slots free
        # on v6e/v7x where the MXU has headroom.
        use_gauss = not ("v6" in kind or "v7" in kind)
    target_steps = 4 if "v7" in kind else 2        # >= 2 steps per TensorCore

    io_dtype = jnp.bfloat16 if use_bf16 else jnp.float32
    x = x.astype(io_dtype)
    k0 = k0.astype(io_dtype)

    # Single-channel bf16 mask (0/1 exact in bf16 -> lossless, 4x fewer bytes).
    if mask.ndim == 3:
        mask1 = mask[:, None].astype(jnp.bfloat16)
    else:
        mask1 = mask[:, :1].astype(jnp.bfloat16)

    if noise_lvl is None:
        dc_weight = 1.0
    else:
        v = float(noise_lvl)
        dc_weight = v / (1.0 + v)

    fxr, fxi = _dft_matrices(nx, io_dtype)
    fyr, fyi = _dft_matrices(ny, io_dtype)

    # ---- VMEM budget & batch-block selection --------------------------------
    budget = int(0.80 * _vmem_capacity_bytes())    # headroom for Mosaic scratch
    io_b = 2 if use_bf16 else 4

    def vmem_estimate(b):
        blk32 = 4 * b * nx * ny                         # one f32 (b,nx,ny) channel
        io = b * nx * ny * (4 * io_b + 2) + 2 * blk32   # x,k0 + mask + f32 out
        const = 2 * (nx * nx + ny * ny) * io_b          # 4 DFT matrices
        live = 12 * blk32                               # T/Z + matmul partials
        gauss = 2 * (nx * nx + ny * ny) * 4 if use_gauss else 0
        return 2 * (io + const) + 2 * blk32 + live + gauss

    B = _pick_batch_block(n, batch_block, budget, vmem_estimate, target_steps)
    grid = (n // B,)
    vmem_limit = int(min(budget, max(int(1.3 * vmem_estimate(B)), 32 << 20)))

    data_spec = pl.BlockSpec((B, 2, nx, ny), lambda b: (b, 0, 0, 0))
    mask_spec = pl.BlockSpec((B, 1, nx, ny), lambda b: (b, 0, 0, 0))
    fx_spec = pl.BlockSpec((nx, nx), lambda b: (0, 0))
    fy_spec = pl.BlockSpec((ny, ny), lambda b: (0, 0))

    n_mm = 3 if use_gauss else 4                   # real matmuls per complex mm
    flops = int(n_mm * 4 * n * nx * ny * (nx + ny))
    bytes_accessed = int(n * nx * ny * (4 * io_b + 2 + 8)
                         + 2 * (nx * nx + ny * ny) * io_b)
    cost = pl.CostEstimate(flops=flops, transcendentals=0,
                           bytes_accessed=bytes_accessed)

    return pl.pallas_call(
        _make_kernel(B, nx, ny, dc_weight, use_gauss,
                     jnp.bfloat16 if use_bf16 else jnp.float32),
        out_shape=jax.ShapeDtypeStruct((n, 2, nx, ny), jnp.float32),
        grid_spec=pltpu.PrefetchScalarGridSpec(
            num_scalar_prefetch=0,
            grid=grid,
            in_specs=[data_spec, data_spec, mask_spec,
                      fx_spec, fx_spec, fy_spec, fy_spec],
            out_specs=data_spec,
            scratch_shapes=[pltpu.VMEM((B * nx, ny), jnp.float32),
                            pltpu.VMEM((B * nx, ny), jnp.float32)]),
        compiler_params=pltpu.CompilerParams(
            dimension_semantics=("parallel",),
            vmem_limit_bytes=vmem_limit),
        cost_estimate=cost,
    )(x, k0, mask1, fxr, fxi, fyr, fyi)


def _reference(x, k0, mask, noise_lvl=None):
    xc = x[:, 0] + 1j * x[:, 1]
    k0c = k0[:, 0] + 1j * k0[:, 1]
    m = mask[:, 0]
    k = jnp.fft.fft2(xc, norm='ortho')
    if noise_lvl is not None:
        out = (1.0 - m) * k + m * (k + noise_lvl * k0c) / (1.0 + noise_lvl)
    else:
        out = (1.0 - m) * k + m * k0c
    xres = jnp.fft.ifft2(out, norm='ortho')
    return jnp.stack([xres.real, xres.imag], axis=1).astype(jnp.float32)


if __name__ == "__main__":
    key = jax.random.PRNGKey(0)
    k1, k2, k3 = jax.random.split(key, 3)

    # --- test 1: module-contract shapes, noise_lvl=None, 4-matmul complex form
    n, nx, ny = 2, 16, 16
    x = jax.random.normal(k1, (n, 2, nx, ny), dtype=jnp.float32)
    k0 = jax.random.normal(k2, (n, 2, nx, ny), dtype=jnp.float32)
    m2d = (jax.random.uniform(k3, (n, 1, nx, ny)) < 0.4).astype(jnp.float32)
    mask = jnp.broadcast_to(m2d, (n, 2, nx, ny))

    out = jax.block_until_ready(
        data_consistency_in_kspace(x, k0, mask, use_gauss=False))
    ref = _reference(x, k0, mask)
    assert out.shape == (n, 2, nx, ny)
    assert jnp.allclose(out, ref, atol=1e-4, rtol=1e-4), "mismatch (test 1, 4M)"

    # --- test 2: batched block (B=2), Gauss 3M form, noise-regularized DC ----
    k4, k5, k6 = jax.random.split(jax.random.PRNGKey(1), 3)
    n2 = 8
    x2 = jax.random.normal(k4, (n2, 2, nx, ny), dtype=jnp.float32)
    k02 = jax.random.normal(k5, (n2, 2, nx, ny), dtype=jnp.float32)
    m2 = (jax.random.uniform(k6, (n2, 1, nx, ny)) < 0.4).astype(jnp.float32)
    mask2 = jnp.broadcast_to(m2, (n2, 2, nx, ny))

    out2 = jax.block_until_ready(
        data_consistency_in_kspace(x2, k02, mask2, noise_lvl=0.05,
                                   batch_block=2, use_gauss=True))
    ref2 = _reference(x2, k02, mask2, noise_lvl=0.05)
    assert jnp.allclose(out2, ref2, atol=1e-4, rtol=1e-4), "mismatch (test 2, Gauss)"

    # --- test 3: bf16 matmul path (loose functional check) -------------------
    out3 = jax.block_until_ready(
        data_consistency_in_kspace(x, k0, mask, use_bf16=True))
    err = float(jnp.max(jnp.abs(out3 - ref)))
    assert err < 0.2, f"bf16 path error too large: {err}"

    print("KERNEL_OK")
</pallas_src>

<mosaic_0001>
module attributes {stable_mosaic.version = 11 : i64} {
  func.func @kernel(%arg0: i32, %arg1: memref<1x2x16x16xf32, #tpu.memory_space<vmem>>, %arg2: memref<1x2x16x16xf32, #tpu.memory_space<vmem>>, %arg3: memref<1x1x16x16xbf16, #tpu.memory_space<vmem>>, %arg4: memref<16x16xf32, #tpu.memory_space<vmem>>, %arg5: memref<16x16xf32, #tpu.memory_space<vmem>>, %arg6: memref<16x16xf32, #tpu.memory_space<vmem>>, %arg7: memref<16x16xf32, #tpu.memory_space<vmem>>, %arg8: memref<1x2x16x16xf32, #tpu.memory_space<vmem>>, %arg9: memref<16x16xf32, #tpu.memory_space<vmem>>, %arg10: memref<16x16xf32, #tpu.memory_space<vmem>>) attributes {dimension_semantics = [#tpu.dimension_semantics<parallel>], iteration_bounds = array<i64: 2>, scalar_prefetch = 0 : i64, scratch_operands = 2 : i64, tpu.core_type = #tpu.core_type<tc>, window_params = [{transform_indices = @transform_0, window_bounds = array<i64: 1, 2, 16, 16>}, {transform_indices = @transform_1, window_bounds = array<i64: 1, 2, 16, 16>}, {transform_indices = @transform_2, window_bounds = array<i64: 1, 1, 16, 16>}, {pipeline_mode = #tpu.pipeline_mode<synchronous>, transform_indices = @transform_3, window_bounds = array<i64: 16, 16>}, {pipeline_mode = #tpu.pipeline_mode<synchronous>, transform_indices = @transform_4, window_bounds = array<i64: 16, 16>}, {pipeline_mode = #tpu.pipeline_mode<synchronous>, transform_indices = @transform_5, window_bounds = array<i64: 16, 16>}, {pipeline_mode = #tpu.pipeline_mode<synchronous>, transform_indices = @transform_6, window_bounds = array<i64: 16, 16>}, {transform_indices = @transform_7, window_bounds = array<i64: 1, 2, 16, 16>}]} {
    %c0 = arith.constant 0 : index
    %c0_0 = arith.constant 0 : index
    %0 = vector.load %arg4[%c0, %c0_0] : memref<16x16xf32, #tpu.memory_space<vmem>>, vector<16x16xf32>
    %c0_1 = arith.constant 0 : index
    %c0_2 = arith.constant 0 : index
    %1 = vector.load %arg5[%c0_1, %c0_2] : memref<16x16xf32, #tpu.memory_space<vmem>>, vector<16x16xf32>
    %c0_3 = arith.constant 0 : index
    %c0_4 = arith.constant 0 : index
    %2 = vector.load %arg6[%c0_3, %c0_4] : memref<16x16xf32, #tpu.memory_space<vmem>>, vector<16x16xf32>
    %c0_5 = arith.constant 0 : index
    %c0_6 = arith.constant 0 : index
    %3 = vector.load %arg7[%c0_5, %c0_6] : memref<16x16xf32, #tpu.memory_space<vmem>>, vector<16x16xf32>
    %c0_7 = arith.constant 0 : index
    %c0_8 = arith.constant 0 : index
    %c0_9 = arith.constant 0 : index
    %c0_10 = arith.constant 0 : index
    %4 = vector.load %arg1[%c0_7, %c0_8, %c0_9, %c0_10] : memref<1x2x16x16xf32, #tpu.memory_space<vmem>>, vector<1x1x16x16xf32>
    %5 = vector.shape_cast %4 : vector<1x1x16x16xf32> to vector<1x16x16xf32>
    %6 = vector.shape_cast %5 : vector<1x16x16xf32> to vector<16x16xf32>
    %c0_11 = arith.constant 0 : index
    %c1 = arith.constant 1 : index
    %c0_12 = arith.constant 0 : index
    %c0_13 = arith.constant 0 : index
    %7 = vector.load %arg1[%c0_11, %c1, %c0_12, %c0_13] : memref<1x2x16x16xf32, #tpu.memory_space<vmem>>, vector<1x1x16x16xf32>
    %8 = vector.shape_cast %7 : vector<1x1x16x16xf32> to vector<1x16x16xf32>
    %9 = vector.shape_cast %8 : vector<1x16x16xf32> to vector<16x16xf32>
    %cst = arith.constant dense<0.000000e+00> : vector<16x16xf32>
    %10 = tpu.matmul %6, %2, %cst {dimension_numbers = #tpu.dot_dimension_numbers<[1], [0], [0], [1], [0, 0, 1, 1], [], []>, precision = #tpu.contract_precision<fp32>} : vector<16x16xf32>, vector<16x16xf32>, vector<16x16xf32> -> vector<16x16xf32>
    %cst_14 = arith.constant dense<0.000000e+00> : vector<16x16xf32>
    %11 = tpu.matmul %9, %3, %cst_14 {dimension_numbers = #tpu.dot_dimension_numbers<[1], [0], [0], [1], [0, 0, 1, 1], [], []>, precision = #tpu.contract_precision<fp32>} : vector<16x16xf32>, vector<16x16xf32>, vector<16x16xf32> -> vector<16x16xf32>
    %cst_15 = arith.constant dense<0.000000e+00> : vector<16x16xf32>
    %12 = tpu.matmul %6, %3, %cst_15 {dimension_numbers = #tpu.dot_dimension_numbers<[1], [0], [0], [1], [0, 0, 1, 1], [], []>, precision = #tpu.contract_precision<fp32>} : vector<16x16xf32>, vector<16x16xf32>, vector<16x16xf32> -> vector<16x16xf32>
    %cst_16 = arith.constant dense<0.000000e+00> : vector<16x16xf32>
    %13 = tpu.matmul %9, %2, %cst_16 {dimension_numbers = #tpu.dot_dimension_numbers<[1], [0], [0], [1], [0, 0, 1, 1], [], []>, precision = #tpu.contract_precision<fp32>} : vector<16x16xf32>, vector<16x16xf32>, vector<16x16xf32> -> vector<16x16xf32>
    %14 = arith.subf %10, %11 : vector<16x16xf32>
    %15 = arith.addf %12, %13 : vector<16x16xf32>
    %cst_17 = arith.constant dense<0.000000e+00> : vector<16x16xf32>
    %16 = tpu.matmul %0, %14, %cst_17 {dimension_numbers = #tpu.dot_dimension_numbers<[1], [0], [0], [1], [0, 0, 1, 1], [], []>, precision = #tpu.contract_precision<fp32>} : vector<16x16xf32>, vector<16x16xf32>, vector<16x16xf32> -> vector<16x16xf32>
    %cst_18 = arith.constant dense<0.000000e+00> : vector<16x16xf32>
    %17 = tpu.matmul %1, %15, %cst_18 {dimension_numbers = #tpu.dot_dimension_numbers<[1], [0], [0], [1], [0, 0, 1, 1], [], []>, precision = #tpu.contract_precision<fp32>} : vector<16x16xf32>, vector<16x16xf32>, vector<16x16xf32> -> vector<16x16xf32>
    %cst_19 = arith.constant dense<0.000000e+00> : vector<16x16xf32>
    %18 = tpu.matmul %0, %15, %cst_19 {dimension_numbers = #tpu.dot_dimension_numbers<[1], [0], [0], [1], [0, 0, 1, 1], [], []>, precision = #tpu.contract_precision<fp32>} : vector<16x16xf32>, vector<16x16xf32>, vector<16x16xf32> -> vector<16x16xf32>
    %cst_20 = arith.constant dense<0.000000e+00> : vector<16x16xf32>
    %19 = tpu.matmul %1, %14, %cst_20 {dimension_numbers = #tpu.dot_dimension_numbers<[1], [0], [0], [1], [0, 0, 1, 1], [], []>, precision = #tpu.contract_precision<fp32>} : vector<16x16xf32>, vector<16x16xf32>, vector<16x16xf32> -> vector<16x16xf32>
    %20 = arith.subf %16, %17 : vector<16x16xf32>
    %21 = arith.addf %18, %19 : vector<16x16xf32>
    %c0_21 = arith.constant 0 : index
    %c0_22 = arith.constant 0 : index
    %c0_23 = arith.constant 0 : index
    %c0_24 = arith.constant 0 : index
    %22 = vector.load %arg3[%c0_21, %c0_22, %c0_23, %c0_24] : memref<1x1x16x16xbf16, #tpu.memory_space<vmem>>, vector<1x1x16x16xbf16>
    %23 = vector.shape_cast %22 : vector<1x1x16x16xbf16> to vector<16x16xbf16>
    %24 = arith.extf %23 : vector<16x16xbf16> to vector<16x16xf32>
    %c0_25 = arith.constant 0 : index
    %c0_26 = arith.constant 0 : index
    %c0_27 = arith.constant 0 : index
    %c0_28 = arith.constant 0 : index
    %25 = vector.load %arg2[%c0_25, %c0_26, %c0_27, %c0_28] : memref<1x2x16x16xf32, #tpu.memory_space<vmem>>, vector<1x1x16x16xf32>
    %26 = vector.shape_cast %25 : vector<1x1x16x16xf32> to vector<16x16xf32>
    %c0_29 = arith.constant 0 : index
    %c1_30 = arith.constant 1 : index
    %c0_31 = arith.constant 0 : index
    %c0_32 = arith.constant 0 : index
    %27 = vector.load %arg2[%c0_29, %c1_30, %c0_31, %c0_32] : memref<1x2x16x16xf32, #tpu.memory_space<vmem>>, vector<1x1x16x16xf32>
    %28 = vector.shape_cast %27 : vector<1x1x16x16xf32> to vector<16x16xf32>
    %29 = arith.subf %26, %20 : vector<16x16xf32>
    %30 = arith.mulf %24, %29 : vector<16x16xf32>
    %31 = arith.addf %20, %30 : vector<16x16xf32>
    %32 = arith.subf %28, %21 : vector<16x16xf32>
    %33 = arith.mulf %24, %32 : vector<16x16xf32>
    %34 = arith.addf %21, %33 : vector<16x16xf32>
    %cst_33 = arith.constant dense<0.000000e+00> : vector<16x16xf32>
    %35 = tpu.matmul %0, %31, %cst_33 {dimension_numbers = #tpu.dot_dimension_numbers<[1], [0], [0], [1], [0, 0, 1, 1], [], []>, precision = #tpu.contract_precision<fp32>} : vector<16x16xf32>, vector<16x16xf32>, vector<16x16xf32> -> vector<16x16xf32>
    %cst_34 = arith.constant dense<0.000000e+00> : vector<16x16xf32>
    %36 = tpu.matmul %1, %34, %cst_34 {dimension_numbers = #tpu.dot_dimension_numbers<[1], [0], [0], [1], [0, 0, 1, 1], [], []>, precision = #tpu.contract_precision<fp32>} : vector<16x16xf32>, vector<16x16xf32>, vector<16x16xf32> -> vector<16x16xf32>
    %cst_35 = arith.constant dense<0.000000e+00> : vector<16x16xf32>
    %37 = tpu.matmul %0, %34, %cst_35 {dimension_numbers = #tpu.dot_dimension_numbers<[1], [0], [0], [1], [0, 0, 1, 1], [], []>, precision = #tpu.contract_precision<fp32>} : vector<16x16xf32>, vector<16x16xf32>, vector<16x16xf32> -> vector<16x16xf32>
    %cst_36 = arith.constant dense<0.000000e+00> : vector<16x16xf32>
    %38 = tpu.matmul %1, %31, %cst_36 {dimension_numbers = #tpu.dot_dimension_numbers<[1], [0], [0], [1], [0, 0, 1, 1], [], []>, precision = #tpu.contract_precision<fp32>} : vector<16x16xf32>, vector<16x16xf32>, vector<16x16xf32> -> vector<16x16xf32>
    %39 = arith.addf %35, %36 : vector<16x16xf32>
    %40 = arith.subf %37, %38 : vector<16x16xf32>
    %c0_37 = arith.constant 0 : index
    %c0_38 = arith.constant 0 : index
    %41 = vector.load %arg9[%c0_37, %c0_38] : memref<16x16xf32, #tpu.memory_space<vmem>>, vector<16x16xf32>
    tpu.vector_store %arg9[%c0_37, %c0_38], %39 {strides = array<i32>} : memref<16x16xf32, #tpu.memory_space<vmem>>, vector<16x16xf32>,
    %c0_39 = arith.constant 0 : index
    %c0_40 = arith.constant 0 : index
    %42 = vector.load %arg10[%c0_39, %c0_40] : memref<16x16xf32, #tpu.memory_space<vmem>>, vector<16x16xf32>
    tpu.vector_store %arg10[%c0_39, %c0_40], %40 {strides = array<i32>} : memref<16x16xf32, #tpu.memory_space<vmem>>, vector<16x16xf32>,
    %c0_41 = arith.constant 0 : index
    %c0_42 = arith.constant 0 : index
    %43 = vector.load %arg9[%c0_41, %c0_42] : memref<16x16xf32, #tpu.memory_space<vmem>>, vector<16x16xf32>
    %c0_43 = arith.constant 0 : index
    %c0_44 = arith.constant 0 : index
    %44 = vector.load %arg10[%c0_43, %c0_44] : memref<16x16xf32, #tpu.memory_space<vmem>>, vector<16x16xf32>
    %cst_45 = arith.constant dense<0.000000e+00> : vector<16x16xf32>
    %45 = tpu.matmul %43, %2, %cst_45 {dimension_numbers = #tpu.dot_dimension_numbers<[1], [0], [0], [1], [0, 0, 1, 1], [], []>, precision = #tpu.contract_precision<fp32>} : vector<16x16xf32>, vector<16x16xf32>, vector<16x16xf32> -> vector<16x16xf32>
    %cst_46 = arith.constant dense<0.000000e+00> : vector<16x16xf32>
    %46 = tpu.matmul %44, %3, %cst_46 {dimension_numbers = #tpu.dot_dimension_numbers<[1], [0], [0], [1], [0, 0, 1, 1], [], []>, precision = #tpu.contract_precision<fp32>} : vector<16x16xf32>, vector<16x16xf32>, vector<16x16xf32> -> vector<16x16xf32>
    %cst_47 = arith.constant dense<0.000000e+00> : vector<16x16xf32>
    %47 = tpu.matmul %43, %3, %cst_47 {dimension_numbers = #tpu.dot_dimension_numbers<[1], [0], [0], [1], [0, 0, 1, 1], [], []>, precision = #tpu.contract_precision<fp32>} : vector<16x16xf32>, vector<16x16xf32>, vector<16x16xf32> -> vector<16x16xf32>
    %cst_48 = arith.constant dense<0.000000e+00> : vector<16x16xf32>
    %48 = tpu.matmul %44, %2, %cst_48 {dimension_numbers = #tpu.dot_dimension_numbers<[1], [0], [0], [1], [0, 0, 1, 1], [], []>, precision = #tpu.contract_precision<fp32>} : vector<16x16xf32>, vector<16x16xf32>, vector<16x16xf32> -> vector<16x16xf32>
    %49 = arith.addf %45, %46 : vector<16x16xf32>
    %50 = arith.subf %48, %47 : vector<16x16xf32>
    %51 = vector.shape_cast %49 : vector<16x16xf32> to vector<1x16x16xf32>
    %c0_49 = arith.constant 0 : index
    %c0_50 = arith.constant 0 : index
    %c0_51 = arith.constant 0 : index
    %c0_52 = arith.constant 0 : index
    %52 = vector.load %arg8[%c0_49, %c0_50, %c0_51, %c0_52] : memref<1x2x16x16xf32, #tpu.memory_space<vmem>>, vector<1x1x16x16xf32>
    %53 = vector.shape_cast %52 : vector<1x1x16x16xf32> to vector<1x16x16xf32>
    %54 = vector.shape_cast %51 : vector<1x16x16xf32> to vector<1x1x16x16xf32>
    tpu.vector_store %arg8[%c0_49, %c0_50, %c0_51, %c0_52], %54 {strides = array<i32>} : memref<1x2x16x16xf32, #tpu.memory_space<vmem>>, vector<1x1x16x16xf32>,
    %55 = vector.shape_cast %50 : vector<16x16xf32> to vector<1x16x16xf32>
    %c0_53 = arith.constant 0 : index
    %c1_54 = arith.constant 1 : index
    %c0_55 = arith.constant 0 : index
    %c0_56 = arith.constant 0 : index
    %56 = vector.load %arg8[%c0_53, %c1_54, %c0_55, %c0_56] : memref<1x2x16x16xf32, #tpu.memory_space<vmem>>, vector<1x1x16x16xf32>
    %57 = vector.shape_cast %56 : vector<1x1x16x16xf32> to vector<1x16x16xf32>
    %58 = vector.shape_cast %55 : vector<1x16x16xf32> to vector<1x1x16x16xf32>
    tpu.vector_store %arg8[%c0_53, %c1_54, %c0_55, %c0_56], %58 {strides = array<i32>} : memref<1x2x16x16xf32, #tpu.memory_space<vmem>>, vector<1x1x16x16xf32>,
    return
  }
  func.func @transform_0(%arg0: i32) -> (i32, i32, i32, i32) {
    %c0_i32 = arith.constant 0 : i32
    %c0_i32_0 = arith.constant 0 : i32
    %c0_i32_1 = arith.constant 0 : i32
    %c0_i32_2 = arith.constant 0 : i32
    return %arg0, %c0_i32, %c0_i32_0, %c0_i32_1 : i32, i32, i32, i32
  }
  func.func @transform_1(%arg0: i32) -> (i32, i32, i32, i32) {
    %c0_i32 = arith.constant 0 : i32
    %c0_i32_0 = arith.constant 0 : i32
    %c0_i32_1 = arith.constant 0 : i32
    %c0_i32_2 = arith.constant 0 : i32
    return %arg0, %c0_i32, %c0_i32_0, %c0_i32_1 : i32, i32, i32, i32
  }
  func.func @transform_2(%arg0: i32) -> (i32, i32, i32, i32) {
    %c0_i32 = arith.constant 0 : i32
    %c0_i32_0 = arith.constant 0 : i32
    %c0_i32_1 = arith.constant 0 : i32
    %c0_i32_2 = arith.constant 0 : i32
    return %arg0, %c0_i32, %c0_i32_0, %c0_i32_1 : i32, i32, i32, i32
  }
  func.func @transform_3(%arg0: i32) -> (i32, i32) {
    %c0_i32 = arith.constant 0 : i32
    %c0_i32_0 = arith.constant 0 : i32
    %c0_i32_1 = arith.constant 0 : i32
    return %c0_i32, %c0_i32_0 : i32, i32
  }
  func.func @transform_4(%arg0: i32) -> (i32, i32) {
    %c0_i32 = arith.constant 0 : i32
    %c0_i32_0 = arith.constant 0 : i32
    %c0_i32_1 = arith.constant 0 : i32
    return %c0_i32, %c0_i32_0 : i32, i32
  }
  func.func @transform_5(%arg0: i32) -> (i32, i32) {
    %c0_i32 = arith.constant 0 : i32
    %c0_i32_0 = arith.constant 0 : i32
    %c0_i32_1 = arith.constant 0 : i32
    return %c0_i32, %c0_i32_0 : i32, i32
  }
  func.func @transform_6(%arg0: i32) -> (i32, i32) {
    %c0_i32 = arith.constant 0 : i32
    %c0_i32_0 = arith.constant 0 : i32
    %c0_i32_1 = arith.constant 0 : i32
    return %c0_i32, %c0_i32_0 : i32, i32
  }
  func.func @transform_7(%arg0: i32) -> (i32, i32, i32, i32) {
    %c0_i32 = arith.constant 0 : i32
    %c0_i32_0 = arith.constant 0 : i32
    %c0_i32_1 = arith.constant 0 : i32
    %c0_i32_2 = arith.constant 0 : i32
    return %arg0, %c0_i32, %c0_i32_0, %c0_i32_1 : i32, i32, i32, i32
  }
}

</mosaic_0001>

<bundles_post_ra>
// kernel: tpu_custom_call.1
= control target key start
LH: loop header
LB: loop body
LE: loop exit
PB: predicated region body
PF: predicated region fallthrough
CT: control target
= control target key end

     0   :  { %s11657_s0 = inlined_call_operand.hbm [shape: f32[2,2,16,16], index: 0, kind: input, shape index: {}]   ;;  %s11658_s1 = inlined_call_operand.hbm [shape: f32[2,2,16,16], index: 1, kind: input, shape index: {}]   ;;  %s11659_s2 = inlined_call_operand.hbm [shape: bf16[2,1,16,16], index: 2, kind: input, shape index: {}]   ;;  %s11660_s3 = inlined_call_operand.hbm [shape: f32[16,16], index: 3, kind: input, shape index: {}]   ;;  %s11661_s4 = inlined_call_operand.hbm [shape: f32[16,16], index: 4, kind: input, shape index: {}]   ;;  %s11662_s5 = inlined_call_operand.vmem [shape: f32[16,16], index: 5, kind: input, shape index: {}]   ;;  %s11663_s6 = inlined_call_operand.hbm [shape: f32[16,16], index: 6, kind: input, shape index: {}]   ;;  %s11664_s7 = inlined_call_operand.hbm [shape: f32[2,2,16,16], index: 7, kind: output, shape index: {}]  }
   0x1   :  { %11688 = sst [smem:[#allocation27_spill]] %s11658_s1 }
   0x2   :  { %11689 = sst [smem:[#allocation28_spill]] %s11660_s3 }
   0x3   :  { %11690 = sst [smem:[#allocation29_spill]] %s11664_s7 }
   0x4   :  { %12 = vsyncpa [#allocation5], 0 }
   0x5   :  { %14 = vsyncpa [#allocation5 + $0x1], 0 }
   0x6   :  { %15 = vsyncpa [#allocation8], 0 }
   0x7   :  { %17 = vsyncpa [#allocation8 + $0x1], 0 }
   0x8   :  { %18 = vsyncpa [#allocation11], 0 }
   0x9   :  { %19 = vsyncpa [#allocation14], 0 }
   0xa   :  { %20 = vsyncpa [#allocation6], 0 }
   0xb   :  { %22 = vsyncpa [#allocation6 + $0x1], 0  ;;  %s10751_s24 = smov 0   ;;  %s10753_s25 = smov 0  }
   0xc   :  { %s10755_s26 = smov 0   ;;  %s10757_s27 = smov 0  }
   0xd LB: > { %11691 = sst [smem:[#allocation21_spill]] %s10684_s24  ;;  %s10772_s28 = sadd.s32 4294967295, %s10696_s27   ;;  %s10696_s27 = sphi %s10757_s27, %s11731_s27   ;;  %s10692_s26 = sphi %s10755_s26, %s11733_s26   ;;  %s10688_s25 = sphi %s10753_s25, %s11735_s25   ;;  %s10684_s24 = sphi %s10751_s24, %s11734_s24  }
   0xe   : > { %11692 = sst [smem:[#allocation22_spill]] %s10692_s26  ;;  %s8701_s29 = sadd.s32 4294967294, %s10696_s27  }
   0xf   : > { %s10776_s30 = sadd.s32 1, %s10696_s27   ;;  %s35_s8 = sadd.s32 1, %s10692_s26 }
  0x10   : > { %11693 = sst [smem:[#allocation23_spill]] %s10776_s30  ;;  %s32_s9 = ssub.s32 %s10696_s27, %s10776_s30 }
  0x11   : > { %p42_p0 = scmp.ne.s32.totalorder %s10692_s26, %s10688_s25  ;;  %p33_p1 = scmp.eq.s32.totalorder %s32_s9, 0 }
  0x12   : > { %p43_p2 = scmp.eq.s32.totalorder %s10696_s27, 0  ;;  %p48_p3 = scmp.ne.s32.totalorder %s10688_s25, %s10684_s24 }
  0x13   : > { %p11665_p4 = scmp.eq.s32.totalorder %s10772_s28, 0  ;;  %p208_p7 = scmp.eq.s32.totalorder %s10772_s28, 1 }
  0x14   : > { %s10788_s10 = scalar_select %p33_p1, %s10692_s26, %s35_s8  }
  0x15   : > { %p10790_p5 = por %p43_p2, %p42_p0  ;;  %p10796_p6 = por %p11665_p4, %p48_p3 }
  0x16   : > { %11694 = sst [smem:[#allocation24_spill]] %s10788_s10  ;;  %p214_p8 = scmp.eq.s32.totalorder %s8701_s29, 1 }
  0x17   : > { %s11695_s11 = scalar_select %p10790_p5, 1, 0 }
  0x18   : > { %s11696_s12 = scalar_select %p10796_p6, 1, 0 }
  0x19   : > { %p8702_p9 = scmp.ge.s32.totalorder %s10696_s27, 1  ;;  %p221_p10 = scmp.lt.s32.totalorder %s10696_s27, 3 }
  0x1a   : > { %p10803_p11 = por %p208_p7, %p42_p0  ;;  %p10807_p12 = por %p214_p8, %p48_p3 }
  0x1b   : > { %p10811_p13 = pnand %p8702_p9, %p221_p10  ;;  %s10698_s16 = smov [#allocation10]  }
  0x1c   : > { %s11697_s13 = scalar_select %p10803_p11, 1, 0 }
  0x1d   : > { %s11699_s14 = scalar_select %p10807_p12, 1, 0 }
  0x1e   : > { %11698 = sst [smem:[#allocation25_spill]] %s11697_s13  ;;  %p10371_p1 = pneg %p10811_p13 }
  0x1f   : > { %11700 = sst [smem:[#allocation26_spill]] %s11699_s14  ;;  %s233_s17 = sshll.u32 %s10698_s16, 4  ;;  %s234_s17 = int_to_ptr.vmem [resolvable:$true] %s233_s17 }
  0x20   : > { %s11701_s15 = scalar_select %p10811_p13, 1, 0 }
  0x21   : > { %p10819_p2 = pnand %p10371_p1, %p11665_p4  ;;  %s10826_s19 = sand.u32 1, %s10692_s26  }
  0x22   : > { %s11703_s3 = sld [smem:[#allocation28_spill]] }
  0x23   : > { %s11702_s18 = scalar_select %p10819_p2, 1, 0 }
  0x24   : > { %p10837_p8 = pneg %p10819_p2 }
  0x26   : > { %s11704_s9 = scalar_select %p10837_p8, 1, 0 }
  0x28   : > { %s10444_s23 = scalar_lea.hbm %s11703_s3, 256 }
  0x29   : > { %p10445_p7 = scmp.ne.s32.totalorder %s11703_s3, %s10444_s23  ;;  %p10451_p1 = scmp.lt.u32.totalorder %s10444_s23, %s11703_s3 }
  0x2b   : > { %p10447_p9 = pnand %p10837_p8, %p10445_p7 }
  0x2d   : > { %p10448_p10 = pneg %p10447_p9 }
  0x2f   : > { %p10453_p0 = pnand %p10451_p1, %p10448_p10 }
  0x31   : > { %10456 = shalt.err (!%p10453_p0)
}
  0x32   : > { %s10457_s21 = scalar_lea.vmem %s234_s17, 256  ;;  %p10465_p11 = scmp.lt.s32.totalorder %s234_s17, %s234_s17 }
  0x33   : > { %p10458_p4 = scmp.ne.s32.totalorder %s234_s17, %s10457_s21  ;;  %p10466_p6 = scmp.lt.s32.totalorder %s10457_s21, %s10457_s21 }
  0x35   : > { %p10460_p3 = pnand %p10458_p4, %p10837_p8  ;;  %p10467_p13 = por %p10466_p6, %p10465_p11 }
  0x37   : > { %p10461_p12 = pneg %p10460_p3 }
  0x39   : > { %p10468_p5 = pnand %p10467_p13, %p10461_p12 }
  0x3b   : > { %10471 = shalt.err (!%p10468_p5)
}
  0x3c   : > { %s11673_s22 = smov 128   ;;  %s10700_s10 = smov 8  }
  0x3d   : > { %10374 = dma.hbm_to_vmem [thread:$0]  (!%p10819_p2), %s11703_s3, 256, %s234_s17, [#allocation11], %s11673_s22, %s11673_s22, %s10700_s10  }
  0x3e   : > { %s11675_s8 = sshll.u32 %s10696_s27, 9  ;;  %p11705_p4 = scmp.ne.s32.totalorder %s11695_s11, 0 }
  0x3f   : > { %p11706_p5 = scmp.lt.s32.totalorder %s10696_s27, 2  ;;  %s297_s21 = sand.u32 1, %s10696_s27  }
  0x40   : > { %s11708_s1 = sld [smem:[#allocation27_spill]]  ;;  %s11709_s14 = sshll.u32 %s10826_s19, 5 }
  0x41   : > { %p10861_p6 = pnand %p11706_p5, %p11705_p4  ;;  %s301_s17 = scalar_lea.vmem [#allocation7], %s11709_s14 }
  0x42   : > { %s308_s11 = sshll.u32 %s301_s17, 4  ;;  %s10877_s23 = scalar_lea.sflag [#allocation8], %s297_s21  ;;  %s10875_s11 = int_to_ptr.vmem [resolvable:$true] %s308_s11 }
  0x43   : > { %s11707_s16 = scalar_select %p10861_p6, 1, 0 }
  0x44   : > { %p10883_p12 = pneg %p10861_p6 }
  0x46   : > { %s10871_s30 = scalar_lea.hbm %s11708_s1, %s11675_s8  ;;  %s10477_s14 = scalar_lea.hbm %s11708_s1, 1024 }
  0x47   : > { %s10472_s29 = scalar_lea.hbm %s10871_s30, 512  ;;  %p10478_p3 = scmp.lt.u32.totalorder %s10871_s30, %s11708_s1 }
  0x48   : > { %p10473_p11 = scmp.ne.s32.totalorder %s10871_s30, %s10472_s29  ;;  %p10479_p7 = scmp.lt.u32.totalorder %s10477_s14, %s10472_s29 }
  0x49   : > { %s11710_s22 = scalar_select %p10883_p12, 1, 0 }
  0x4a   : > { %p10475_p13 = pnand %p10883_p12, %p10473_p11  ;;  %p10480_p9 = por %p10479_p7, %p10478_p3 }
  0x4b   : > { %p10481_p10 = scmp.lt.u32.totalorder %s10472_s29, %s10871_s30 }
  0x4c   : > { %p10476_p0 = pneg %p10475_p13 }
  0x4d   : > { %p10482_p1 = por %p10481_p10, %p10480_p9 }
  0x4f   : > { %p10483_p4 = pnand %p10482_p1, %p10476_p0 }
  0x51   : > { %10486 = shalt.err (!%p10483_p4)
}
  0x52   : > { %s10487_s21 = scalar_lea.vmem %s10875_s11, 512  ;;  %s10701_s26 = smov [#allocation7]  }
  0x53   : > { %p10488_p5 = scmp.ne.s32.totalorder %s10875_s11, %s10487_s21  ;;  %s10492_s20 = sshll.u32 %s10701_s26, 4  ;;  %s10493_s20 = int_to_ptr.vmem [resolvable:$false] %s10492_s20 }
  0x54   : > { %s10494_s8 = scalar_lea.vmem %s10493_s20, 1024  ;;  %p10495_p2 = scmp.lt.s32.totalorder %s10875_s11, %s10493_s20 }
  0x55   : > { %p10490_p11 = pnand %p10488_p5, %p10883_p12  ;;  %p10496_p8 = scmp.lt.s32.totalorder %s10494_s8, %s10487_s21 }
  0x57   : > { %p10491_p13 = pneg %p10490_p11  ;;  %p10497_p3 = por %p10496_p8, %p10495_p2 }
  0x59   : > { %p10498_p7 = pnand %p10497_p3, %p10491_p13 }
  0x5b   : > { %10501 = shalt.err (!%p10498_p7)
}
  0x5c   : > { %s11711_s29 = smov 128   ;;  %s10702_s14 = smov [#allocation12]  }
  0x5d   : > { %10387 = dma.hbm_to_vmem [thread:$0]  (!%p10861_p6), %s10871_s30, 512, %s10875_s11, %s10877_s23, %s11711_s29, %s11711_s29, %s10700_s10  }
  0x5e   : > { %s246_s17 = sshll.u32 %s10702_s14, 4  ;;  %s10703_s26 = smov [#allocation13]   ;;  %s247_s17 = int_to_ptr.vmem [resolvable:$true] %s246_s17 }
  0x5f   : > { %s262_s1 = sshll.u32 %s10703_s26, 4  ;;  %s10502_s8 = scalar_lea.hbm %s11661_s4, 256  ;;  %s263_s1 = int_to_ptr.vmem [resolvable:$true] %s262_s1 }
  0x60   : > { %p10503_p2 = scmp.ne.s32.totalorder %s11661_s4, %s10502_s8  ;;  %p11712_p8 = scmp.ne.s32.totalorder %s11704_s9, 0 }
  0x61   : > { %p10509_p10 = scmp.lt.u32.totalorder %s10502_s8, %s11661_s4 }
  0x62   : > { %p10505_p0 = pnand %p10503_p2, %p11712_p8 }
  0x64   : > { %p10506_p9 = pneg %p10505_p0 }
  0x66   : > { %p10511_p1 = pnand %p10509_p10, %p10506_p9 }
  0x68   : > { %10514 = shalt.err (!%p10511_p1)
}
  0x69   : > { %s10515_s30 = scalar_lea.vmem %s247_s17, 256  ;;  %p10523_p13 = scmp.lt.s32.totalorder %s247_s17, %s247_s17 }
  0x6a   : > { %p10516_p4 = scmp.ne.s32.totalorder %s247_s17, %s10515_s30  ;;  %p10524_p3 = scmp.lt.s32.totalorder %s10515_s30, %s10515_s30 }
  0x6c   : > { %p10518_p5 = pnand %p10516_p4, %p11712_p8  ;;  %p10525_p7 = por %p10524_p3, %p10523_p13 }
  0x6e   : > { %p10519_p11 = pneg %p10518_p5 }
  0x70   : > { %p10526_p6 = pnand %p10525_p7, %p10519_p11 }
  0x72   : > { %10529 = shalt.err (!%p10526_p6)
}
  0x73   : > { %p11713_p2 = scmp.ne.s32.totalorder %s11702_s18, 0  ;;  %s10530_s11 = scalar_lea.hbm %s11663_s6, 256 }
  0x74   : > { %p10531_p0 = scmp.ne.s32.totalorder %s11663_s6, %s10530_s11  ;;  %p10537_p10 = scmp.lt.u32.totalorder %s10530_s11, %s11663_s6 }
  0x75   : > { %10377 = dma.hbm_to_vmem [thread:$0]  (!%p11713_p2), %s11661_s4, 256, %s247_s17, [#allocation11], %s11711_s29, %s11711_s29, %s10700_s10  }
  0x76   : > { %p10533_p6 = pnand %p10531_p0, %p11712_p8 }
  0x78   : > { %p10534_p9 = pneg %p10533_p6 }
  0x7a   : > { %p10539_p1 = pnand %p10537_p10, %p10534_p9 }
  0x7c   : > { %10542 = shalt.err (!%p10539_p1)
}
  0x7d   : > { %s10543_s8 = scalar_lea.vmem %s263_s1, 256  ;;  %p10551_p13 = scmp.lt.s32.totalorder %s263_s1, %s263_s1 }
  0x7e   : > { %p10544_p4 = scmp.ne.s32.totalorder %s263_s1, %s10543_s8  ;;  %p10552_p3 = scmp.lt.s32.totalorder %s10543_s8, %s10543_s8 }
  0x80   : > { %p10546_p5 = pnand %p10544_p4, %p11712_p8  ;;  %p10553_p7 = por %p10552_p3, %p10551_p13 }
  0x82   : > { %p10547_p11 = pneg %p10546_p5 }
  0x84   : > { %p10554_p12 = pnand %p10553_p7, %p10547_p11 }
  0x86   : > { %10557 = shalt.err (!%p10554_p12)
}
  0x87   : > { %10380 = dma.hbm_to_vmem [thread:$0]  (!%p11713_p2), %s11663_s6, 256, %s263_s1, [#allocation14], %s11711_s29, %s11711_s29, %s10700_s10  }
  0x88   : > { %s11714_s9 = sshll.u32 %s10696_s27, 9  ;;  %s11715_s13 = sshll.u32 %s10826_s19, 5 }
  0x89   : > { %s10957_s24 = scalar_lea.hbm %s11657_s0, %s11714_s9  ;;  %s280_s18 = scalar_lea.vmem [#allocation4], %s11715_s13 }
  0x8a   : > { %s287_s11 = sshll.u32 %s280_s18, 4  ;;  %s8713_s14 = sshll.u32 %s10826_s19, 3  ;;  %s10962_s11 = int_to_ptr.vmem [resolvable:$true] %s287_s11 }
  0x8b   : > { %s277_s26 = scalar_lea.sflag [#allocation5], %s10826_s19  ;;  %s10558_s20 = scalar_lea.hbm %s10957_s24, 512 }
  0x8c   : > { %p10559_p12 = scmp.ne.s32.totalorder %s10957_s24, %s10558_s20  ;;  %p11716_p8 = scmp.ne.s32.totalorder %s11710_s22, 0 }
  0x8d   : > { %s10563_s8 = scalar_lea.hbm %s11657_s0, 1024  ;;  %p10564_p6 = scmp.lt.u32.totalorder %s10957_s24, %s11657_s0 }
  0x8e   : > { %p10561_p2 = pnand %p10559_p12, %p11716_p8  ;;  %p10565_p9 = scmp.lt.u32.totalorder %s10563_s8, %s10558_s20 }
  0x8f   : > { %p10567_p1 = scmp.lt.u32.totalorder %s10558_s20, %s10957_s24 }
  0x90   : > { %p10562_p0 = pneg %p10561_p2  ;;  %p10566_p10 = por %p10565_p9, %p10564_p6 }
  0x92   : > { %p10568_p4 = por %p10567_p1, %p10566_p10 }
  0x94   : > { %p10569_p5 = pnand %p10568_p4, %p10562_p0 }
  0x96   : > { %10572 = shalt.err (!%p10569_p5)
}
  0x97   : > { %s10573_s9 = scalar_lea.vmem %s10962_s11, 512  ;;  %s10704_s3 = smov [#allocation4]  }
  0x98   : > { %p10574_p11 = scmp.ne.s32.totalorder %s10962_s11, %s10573_s9  ;;  %s10578_s7 = sshll.u32 %s10704_s3, 4  ;;  %s10579_s7 = int_to_ptr.vmem [resolvable:$false] %s10578_s7 }
  0x99   : > { %s10580_s13 = scalar_lea.vmem %s10579_s7, 1024  ;;  %p10581_p7 = scmp.lt.s32.totalorder %s10962_s11, %s10579_s7 }
  0x9a   : > { %p10576_p13 = pnand %p10574_p11, %p11716_p8  ;;  %p10582_p12 = scmp.lt.s32.totalorder %s10580_s13, %s10573_s9 }
  0x9c   : > { %p10577_p3 = pneg %p10576_p13  ;;  %p10583_p2 = por %p10582_p12, %p10581_p7 }
  0x9e   : > { %p10584_p6 = pnand %p10583_p2, %p10577_p3 }
  0xa0   : > { %10587 = shalt.err (!%p10584_p6)
}
  0xa1   : > { %p11717_p0 = scmp.ne.s32.totalorder %s11707_s16, 0  ;;  %s8737_s18 = sshll.u32 %s10696_s27, 7 }
  0xa2   : > { %s322_s20 = scalar_lea.vmem [#allocation9], %s8713_s14  ;;  %s10997_s17 = scalar_lea.hbm %s11659_s2, %s8737_s18 }
  0xa3   : > { %10384 = dma.hbm_to_vmem [thread:$0]  (!%p11717_p0), %s10957_s24, 512, %s10962_s11, %s277_s26, %s11711_s29, %s11711_s29, %s10700_s10  }
  0xa4   : > { %s329_s1 = sshll.u32 %s322_s20, 4  ;;  %s10588_s30 = scalar_lea.hbm %s10997_s17, 128  ;;  %s10999_s1 = int_to_ptr.vmem [resolvable:$true] %s329_s1 }
  0xa5   : > { %p10589_p9 = scmp.ne.s32.totalorder %s10997_s17, %s10588_s30  ;;  %s10593_s29 = scalar_lea.hbm %s11659_s2, 256 }
  0xa6   : > { %p10594_p4 = scmp.lt.u32.totalorder %s10997_s17, %s11659_s2  ;;  %p10595_p5 = scmp.lt.u32.totalorder %s10593_s29, %s10588_s30 }
  0xa7   : > { %p10591_p10 = pnand %p10589_p9, %p11716_p8  ;;  %p10597_p13 = scmp.lt.u32.totalorder %s10588_s30, %s10997_s17 }
  0xa8   : > { %p10596_p11 = por %p10595_p5, %p10594_p4 }
  0xa9   : > { %p10592_p1 = pneg %p10591_p10 }
  0xaa   : > { %p10598_p3 = por %p10597_p13, %p10596_p11 }
  0xac   : > { %p10599_p7 = pnand %p10598_p3, %p10592_p1 }
  0xae   : > { %10602 = shalt.err (!%p10599_p7)
}
  0xaf   : > { %s10603_s14 = scalar_lea.vmem %s10999_s1, 128  ;;  %s10705_s26 = smov [#allocation9]  }
  0xb0   : > { %p10604_p12 = scmp.ne.s32.totalorder %s10999_s1, %s10603_s14  ;;  %s10608_s9 = sshll.u32 %s10705_s26, 4  ;;  %s10609_s9 = int_to_ptr.vmem [resolvable:$false] %s10608_s9 }
  0xb1   : > { %s10610_s3 = scalar_lea.vmem %s10609_s9, 256  ;;  %p10611_p9 = scmp.lt.s32.totalorder %s10999_s1, %s10609_s9 }
  0xb2   : > { %p10606_p2 = pnand %p10604_p12, %p11716_p8  ;;  %p10612_p10 = scmp.lt.s32.totalorder %s10610_s3, %s10603_s14 }
  0xb4   : > { %p10607_p6 = pneg %p10606_p2  ;;  %p10613_p4 = por %p10612_p10, %p10611_p9 }
  0xb6   : > { %p10614_p5 = pnand %p10613_p4, %p10607_p6 }
  0xb8   : > { %10617 = shalt.err (!%p10614_p5)
}
  0xb9   : > { %s10706_s7 = smov 64   ;;  %s10707_s13 = smov 4  }
  0xba   : > { %10390 = dma.hbm_to_vmem [thread:$0]  (!%p11717_p0), %s10997_s17, 128, %s10999_s1, %s10877_s23, %s10706_s7, %s10706_s7, %s10707_s13  }
  0xbb   : > { %p11718_p8 = scmp.ne.s32.totalorder %s11701_s15, 0 }
  0xbc   : > { %s11026_s22 = sand.u32 (!%p11718_p8), 1, %s10688_s25   ;;  %p11719_p1 = scmp.ne.s32.totalorder (!%p11718_p8), %s11696_s12, 0 }
  0xbd   : > { %341 = sbr.rel (%p11718_p8) target bundleno = 1517 (0x5ed), region = 48  ;;  %s11029_s18 = sshll.u32 (!%p11718_p8), %s11026_s22, 5 }
  0xbe   : > { %s344_s20 = scalar_lea.sflag (!%p11718_p8), [#allocation5], %s11026_s22  ;;  %s347_s21 = scalar_lea.vmem (!%p11718_p8), [#allocation4], %s11029_s18 }
  0xc4   : > { %10663 = dma.done.wait (%p11719_p1), %s344_s20, 512  }
  0xc5   : > { %10665 = vsyncadd (%p11719_p1), %s344_s20, 4294966784  ;;  %s352_s15 = sand.u32 1, %s10772_s28   ;;  %s11039_s23 = scalar_lea.vmem [#allocation7], %s11029_s18 }
  0xc6   : > { %s353_s16 = scalar_lea.sflag [#allocation8], %s352_s15 }
  0xc7   : > { %10667 = dma.done.wait (%p11719_p1), %s353_s16, 640  }
  0xc8   : > { %10669 = vsyncadd (%p11719_p1), %s353_s16, 4294966656  ;;  %s8719_s1 = sshll.u32 %s11026_s22, 3  ;;  %p11720_p0 = scmp.eq.s32.totalorder %s10772_s28, 0 }
  0xc9   : > { %s11046_s8 = scalar_lea.vmem [#allocation9], %s8719_s1 }
  0xca   : > { %10671 = dma.done.wait (%p11720_p0), [#allocation11], 512   ;;  %p11721_p11 = pmov %p11720_p0 }
  0xcb   : > { %p11722_p13 = pmov %p11720_p0 }
  0xcc   : > { %10673 = vsyncadd (%p11721_p11), [#allocation11], 4294966784 }
  0xcd   : > { %10675 = dma.done.wait (%p11722_p13), [#allocation14], 256   ;;  %p11723_p3 = pmov %p11720_p0 }
  0xce   : > { %vm431_vm0 = vcmask 130048   ;;  %v422_v0 = vld [vmem:[%s11662_s5] sm:$0xff]  ;;  %v423_v1 = vld [vmem:[%s11662_s5 + $0x8] sm:$0xff]  ;;  %v8724_v6 = vld [vmem:[%s347_s21 + $0x10] sm:$0xff]  ;;  %s11724_s19 = sld [smem:[#allocation25_spill]]  ;;  %s417_s29 = scalar_lea.vmem [#allocation15], %s11029_s18 }
  0xcf   : > { %10677 = vsyncadd (%p11723_p3), [#allocation14], 4294967040  ;;  %v426_v2 = vld [vmem:[%s347_s21] sm:$0xff]  ;;  %v439_v3 = vand.u32 4294901760, %v422_v0  ;;  %v442_v4 = vand.u32 4294901760, %v423_v1  ;;  %v427_v7 = vld [vmem:[%s347_s21 + $0x8] sm:$0xff] }
  0xd0   : > { %v433_v5 = vsel %vm431_vm0, %v426_v2, 0  ;;  %v8725_v8 = vld [vmem:[%s347_s21 + $0x18] sm:$0xff]  ;;  %v941_v10 = vsel %vm431_vm0, %v8724_v6, 0  ;;  %v436_v11 = vsel %vm431_vm0, %v427_v7, 0  ;;  %v424_v44 = vld [vmem:[#allocation13] sm:$0xff]  ;;  %v420_v61 = vld [vmem:[#allocation12] sm:$0xff] }
  0xd1   : > { %v11063_v9 = vand.u32 4294901760, %v433_v5  ;;  %v944_v12 = vsel %vm431_vm0, %v8725_v8, 0  ;;  %v11068_v13 = vpack.c.bf16 %v442_v4, %v439_v3  ;;  %v11070_v14 = vand.u32 4294901760, %v941_v10  ;;  %v425_v45 = vld [vmem:[#allocation13 + $0x8] sm:$0xff]  ;;  %v418_v60 = vld [vmem:[#allocation10] sm:$0xff]  ;;  %s8556_s24 = sshll.u32 %s417_s29, 4  ;;  %s11606_s24 = int_to_ptr.vmem [resolvable:$true] %s8556_s24 }
  0xd2   : > { %v11072_v15 = vand.u32 4294901760, %v436_v11  ;;  %v11074_v16 = vand.u32 4294901760, %v944_v12  ;;  %v527_v18 = vsub.f32 %v422_v0, %v439_v3  ;;  %v534_v19 = vsub.f32 %v423_v1, %v442_v4  ;;  %s8738_s11 = sshll.u32 %s10772_s28, 9  ;;  %s11725_s9 = sld [smem:[#allocation29_spill]] }
  0xd3   : > { %v11077_v17 = vsub.f32 %v433_v5, %v11063_v9  ;;  %9800 = vmatprep.subr.bf16.mxu1 %v11068_v13  ;;  %9848 = vmatprep.subr.bf16.mxu0 %v11068_v13  ;;  %v11082_v20 = vsub.f32 %v941_v10, %v11070_v14  ;;  %v947_v46 = vand.u32 4294901760, %v424_v44  ;;  %v950_v47 = vand.u32 4294901760, %v425_v45  ;;  %s8543_s7 = scalar_lea.sflag [#allocation6], %s11026_s22  ;;  %s10618_s13 = scalar_lea.vmem %s11606_s24, 512 }
  0xd4   : > { %v11085_v21 = vsub.f32 %v436_v11, %v11072_v15  ;;  %v11088_v22 = vsub.f32 %v944_v12, %v11074_v16  ;;  %9802 = vmatpush3.bf16.msra.mxu1 %v11068_v13  ;;  %9850 = vmatpush3.bf16.msra.mxu0 %v11068_v13  ;;  %v528_v24 = vand.u32 4294901760, %v527_v18  ;;  %v535_v25 = vand.u32 4294901760, %v534_v19  ;;  %v419_v12 = vld [vmem:[#allocation10 + $0x8] sm:$0xff]  ;;  %p10619_p7 = scmp.ne.s32.totalorder %s11606_s24, %s10618_s13  ;;  %p11726_p12 = scmp.ne.s32.totalorder %s11724_s19, 0 }
  0xd5   : > { %v11093_v23 = vand.u32 4294901760, %v11077_v17  ;;  %v11096_v26 = vand.u32 4294901760, %v11082_v20  ;;  %v11125_v42 = vpack.c.bf16 %v534_v19, %v527_v18  ;;  %v1035_v48 = vsub.f32 %v424_v44, %v947_v46  ;;  %s10708_s28 = smov [#allocation15]  }
  0xd6   : > { %v11099_v27 = vand.u32 4294901760, %v11085_v21  ;;  %v11102_v28 = vand.u32 4294901760, %v11088_v22  ;;  %v529_v30 = vsub.f32 %v527_v18, %v528_v24  ;;  %v536_v31 = vsub.f32 %v534_v19, %v535_v25  ;;  %p10620_p2 = pnand %p10619_p7, %p11726_p12  ;;  %s10622_s18 = sshll.u32 %s10708_s28, 4  ;;  %s10623_s18 = int_to_ptr.vmem [resolvable:$false] %s10622_s18 }
  0xd7   : > { %v508_v29 = vsub.f32 %v11077_v17, %v11093_v23  ;;  %v1016_v32 = vsub.f32 %v11082_v20, %v11096_v26  ;;  %v11144_v43 = vpack.c.bf16 %v535_v25, %v528_v24  ;;  %v1042_v49 = vsub.f32 %v425_v45, %v950_v47  ;;  %s10624_s20 = scalar_lea.vmem %s10623_s18, 1024  ;;  %p10625_p9 = scmp.lt.s32.totalorder %s11606_s24, %s10623_s18 }
  0xd8   : > { %v518_v33 = vsub.f32 %v11085_v21, %v11099_v27  ;;  %v1026_v34 = vsub.f32 %v11088_v22, %v11102_v28  ;;  %v530_v36 = vand.u32 4294901760, %v529_v30  ;;  %v537_v37 = vand.u32 4294901760, %v536_v31  ;;  %s11611_s3 = scalar_lea.hbm %s11725_s9, %s8738_s11  ;;  %p10621_p6 = pneg %p10620_p2 }
  0xd9   : > { %v11112_v35 = vand.u32 4294901760, %v508_v29  ;;  %v11114_v38 = vand.u32 4294901760, %v1016_v32  ;;  %v1036_v50 = vand.u32 4294901760, %v1035_v48  ;;  %v1043_v51 = vand.u32 4294901760, %v1042_v49  ;;  %p10626_p10 = scmp.lt.s32.totalorder %s10624_s20, %s10618_s13 }
  0xda   : > { %v11116_v39 = vand.u32 4294901760, %v518_v33  ;;  %v11118_v40 = vand.u32 4294901760, %v1026_v34  ;;  %v11121_v41 = vpack.c.bf16 %v537_v37, %v530_v36  ;;  %v11162_v52 = vpack.c.bf16 %v950_v47, %v947_v46 }
  0xdb   : > { %9131 = vmatprep.mubr.f32.mxu1 %v11112_v35  ;;  %9215 = vmatprep.mubr.f32.mxu0 %v11114_v38  ;;  %v1037_v53 = vsub.f32 %v1035_v48, %v1036_v50  ;;  %v1044_v54 = vsub.f32 %v1042_v49, %v1043_v51  ;;  %v11179_v58 = vpack.c.bf16 %v1042_v49, %v1035_v48  ;;  %v2455_v62 = vsel %vm431_vm0, %v418_v60, 0  ;;  %p10627_p4 = por %p10626_p10, %p10625_p9 }
  0xdc   : > { %9132 = vmatmul.mubr.f32.vlgmr.msra.gmra.mrb[0].mxu1 %v11116_v39  ;;  %9216 = vmatmul.mubr.f32.vlgmr.msra.gmra.mrb[0].mxu0 %v11118_v40  ;;  %v11199_v59 = vpack.c.bf16 %v1043_v51, %v1036_v50  ;;  %v2963_v63 = vsel %vm431_vm0, %v420_v61, 0  ;;  %v11228_v0 = vand.u32 4294901760, %v2455_v62 }
  0xdd   : > { %9804 = vmatprep.subr.bf16.mxu1 %v11121_v41  ;;  %9852 = vmatprep.subr.bf16.mxu0 %v11121_v41  ;;  %v1038_v55 = vand.u32 4294901760, %v1037_v53  ;;  %v1045_v56 = vand.u32 4294901760, %v1044_v54  ;;  %v11230_v1 = vand.u32 4294901760, %v2963_v63  ;;  %p10628_p5 = pnand %p10627_p4, %p10621_p6 }
  0xde   : > { %9806 = vmatpush3.bf16.msra.mxu1 %v11121_v41  ;;  %9854 = vmatpush3.bf16.msra.mxu0 %v11121_v41  ;;  %v11233_v2 = vsub.f32 %v2455_v62, %v11228_v0 }
  0xdf   : > { %9138 = vmatprep.mubr.f32.mxu1 %v11063_v9  ;;  %9222 = vmatprep.mubr.f32.mxu0 %v11070_v14  ;;  %v11172_v57 = vpack.c.bf16 %v1045_v56, %v1038_v55  ;;  %v11236_v3 = vsub.f32 %v2963_v63, %v11230_v1 }
  0xe0   : > { %9808 = vmatprep.subr.bf16.mxu1 %v11125_v42  ;;  %9856 = vmatprep.subr.bf16.mxu0 %v11125_v42  ;;  %v11239_v4 = vand.u32 4294901760, %v11233_v2 }
  0xe1   : > { %v11242_v5 = vand.u32 4294901760, %v11236_v3 }
  0xe2   : > { %v2530_v6 = vsub.f32 %v11233_v2, %v11239_v4 }
  0xe3   : > { %v3038_v7 = vsub.f32 %v11236_v3, %v11242_v5 }
  0xe4   : > { %9139 = vmatmul.mubr.f32.vlgmr.msra.gmra.mrb[0].mxu1 %v11072_v15  ;;  %9223 = vmatmul.mubr.f32.vlgmr.msra.gmra.mrb[0].mxu0 %v11074_v16  ;;  %v11248_v8 = vand.u32 4294901760, %v2530_v6 }
  0xe5   : > { %9810 = vmatpush3.bf16.msra.mxu1 %v11125_v42  ;;  %9858 = vmatpush3.bf16.msra.mxu0 %v11125_v42 }
  0xe6   : > { %9145 = vmatprep.mubr.f32.mxu1 %v11077_v17  ;;  %9229 = vmatprep.mubr.f32.mxu0 %v11082_v20 }
  0xe7   : > { %9812 = vmatprep.subr.bf16.mxu1 %v11068_v13  ;;  %9860 = vmatprep.subr.bf16.mxu0 %v11068_v13 }
  0xec   : > { %9146 = vmatmul.mubr.f32.vlgmr.msra.gmra.mrb[0].mxu1 %v11085_v21  ;;  %9230 = vmatmul.mubr.f32.vlgmr.msra.gmra.mrb[0].mxu0 %v11088_v22 }
  0xed   : > { %9814 = vmatpush3.bf16.msra.mxu1 %v11068_v13  ;;  %9862 = vmatpush3.bf16.msra.mxu0 %v11068_v13 }
  0xee   : > { %9152 = vmatprep.mubr.f32.mxu1 %v11093_v23  ;;  %9236 = vmatprep.mubr.f32.mxu0 %v11096_v26 }
  0xef   : > { %9816 = vmatprep.subr.bf16.mxu1 %v11144_v43  ;;  %9864 = vmatprep.subr.bf16.mxu0 %v11144_v43 }
  0xf4   : > { %9153 = vmatmul.mubr.f32.vlgmr.msra.gmra.mrb[0].mxu1 %v11099_v27  ;;  %9237 = vmatmul.mubr.f32.vlgmr.msra.gmra.mrb[0].mxu0 %v11102_v28 }
  0xf5   : > { %9818 = vmatpush3.bf16.msra.mxu1 %v11144_v43  ;;  %9866 = vmatpush3.bf16.msra.mxu0 %v11144_v43 }
  0xf6   : > { %9159 = vmatprep.mubr.f32.mxu1 %v11063_v9  ;;  %9243 = vmatprep.mubr.f32.mxu0 %v11070_v14 }
  0xf7   : > { %9820 = vmatprep.subr.bf16.mxu1 %v11068_v13  ;;  %9868 = vmatprep.subr.bf16.mxu0 %v11068_v13 }
  0xfc   : > { %9160 = vmatmul.mubr.f32.vlgmr.msra.gmra.mrb[0].mxu1 %v11072_v15  ;;  %9244 = vmatmul.mubr.f32.vlgmr.msra.gmra.mrb[0].mxu0 %v11074_v16 }
  0xfd   : > { %9822 = vmatpush3.bf16.msra.mxu1 %v11068_v13  ;;  %9870 = vmatpush3.bf16.msra.mxu0 %v11068_v13 }
  0xfe   : > { %9166 = vmatprep.mubr.f32.mxu1 %v11063_v9  ;;  %9250 = vmatprep.mubr.f32.mxu0 %v11070_v14 }
  0xff   : > { %9824 = vmatprep.subr.bf16.mxu1 %v11162_v52  ;;  %9872 = vmatprep.subr.bf16.mxu0 %v11162_v52 }
 0x104   : > { %9167 = vmatmul.mubr.f32.vlgmr.msra.gmra.mrb[0].mxu1 %v11072_v15  ;;  %9251 = vmatmul.mubr.f32.vlgmr.msra.gmra.mrb[0].mxu0 %v11074_v16 }
 0x105   : > { %9826 = vmatpush3.bf16.msra.mxu1 %v11162_v52  ;;  %9173 = vmatprep.mubr.f32.mxu1 %v11114_v38 }
 0x106   : > { %9874 = vmatpush3.bf16.msra.mxu0 %v11162_v52  ;;  %9257 = vmatprep.mubr.f32.mxu0 %v11112_v35 }
 0x107   : > { %9828 = vmatprep.subr.bf16.mxu1 %v11172_v57  ;;  %9876 = vmatprep.subr.bf16.mxu0 %v11172_v57 }
 0x108   : > { %9174 = vmatmul.mubr.f32.vlgmr.msra.gmra.mrb[2].mxu1 %v11118_v40 }
 0x109   : > { %9830 = vmatpush3.bf16.msra.mxu1 %v11172_v57  ;;  %9180 = vmatprep.mubr.f32.mxu1 %v11070_v14 }
 0x10a   : > { %9832 = vmatprep.subr.bf16.mxu1 %v11179_v58 }
 0x10c   : > { %9258 = vmatmul.mubr.f32.vlgmr.msra.gmra.mrb[0].mxu0 %v11116_v39 }
 0x10d   : > { %9878 = vmatpush3.bf16.msra.mxu0 %v11172_v57  ;;  %9264 = vmatprep.mubr.f32.mxu0 %v11063_v9 }
 0x10e   : > { %9880 = vmatprep.subr.bf16.mxu0 %v11179_v58 }
 0x110   : > { %9181 = vmatmul.mubr.f32.vlgmr.msra.gmra.mrb[2].mxu1 %v11074_v16 }
 0x111   : > { %9834 = vmatpush3.bf16.msra.mxu1 %v11179_v58  ;;  %9187 = vmatprep.mubr.f32.mxu1 %v11082_v20 }
 0x112   : > { %9836 = vmatprep.subr.bf16.mxu1 %v11162_v52 }
 0x114   : > { %9265 = vmatmul.mubr.f32.vlgmr.msra.gmra.mrb[0].mxu0 %v11072_v15 }
 0x115   : > { %9882 = vmatpush3.bf16.msra.mxu0 %v11179_v58  ;;  %9271 = vmatprep.mubr.f32.mxu0 %v11077_v17 }
 0x116   : > { %9884 = vmatprep.subr.bf16.mxu0 %v11162_v52 }
 0x118   : > { %9188 = vmatmul.mubr.f32.vlgmr.msra.gmra.mrb[2].mxu1 %v11088_v22 }
 0x119   : > { %9838 = vmatpush3.bf16.msra.mxu1 %v11162_v52  ;;  %9194 = vmatprep.mubr.f32.mxu1 %v11096_v26 }
 0x11a   : > { %9840 = vmatprep.subr.bf16.mxu1 %v11199_v59 }
 0x11c   : > { %9272 = vmatmul.mubr.f32.vlgmr.msra.gmra.mrb[0].mxu0 %v11085_v21 }
 0x11d   : > { %9886 = vmatpush3.bf16.msra.mxu0 %v11162_v52  ;;  %9278 = vmatprep.mubr.f32.mxu0 %v11093_v23 }
 0x11e   : > { %9888 = vmatprep.subr.bf16.mxu0 %v11199_v59 }
 0x120   : > { %9195 = vmatmul.mubr.f32.vlgmr.msra.gmra.mrb[2].mxu1 %v11102_v28 }
 0x121   : > { %9842 = vmatpush3.bf16.msra.mxu1 %v11199_v59  ;;  %9201 = vmatprep.mubr.f32.mxu1 %v11070_v14 }
 0x122   : > { %9844 = vmatprep.subr.bf16.mxu1 %v11162_v52 }
 0x124   : > { %9279 = vmatmul.mubr.f32.vlgmr.msra.gmra.mrb[0].mxu0 %v11099_v27 }
 0x125   : > { %9890 = vmatpush3.bf16.msra.mxu0 %v11199_v59  ;;  %9285 = vmatprep.mubr.f32.mxu0 %v11063_v9 }
 0x126   : > { %9892 = vmatprep.subr.bf16.mxu0 %v11162_v52 }
 0x128   : > { %9202 = vmatmul.mubr.f32.vlgmr.msra.gmra.mrb[2].mxu1 %v11074_v16 }
 0x129   : > { %9846 = vmatpush3.bf16.msra.mxu1 %v11162_v52  ;;  %9208 = vmatprep.mubr.f32.mxu1 %v11070_v14  ;;  %v421_v14 = vld [vmem:[#allocation12 + $0x8] sm:$0xff] }
 0x12c   : > { %9286 = vmatmul.mubr.f32.vlgmr.msra.gmra.mrb[0].mxu0 %v11072_v15 }
 0x12d   : > { %9894 = vmatpush3.bf16.msra.mxu0 %v11162_v52  ;;  %9292 = vmatprep.mubr.f32.mxu0 %v11063_v9  ;;  %v11250_v9 = vand.u32 4294901760, %v3038_v7 }
 0x130   : > { %9209 = vmatmul.mubr.f32.vlgmr.msra.gmra.mrb[2].mxu1 %v11074_v16  ;;  %v2966_v16 = vsel %vm431_vm0, %v421_v14, 0 }
 0x131   : > { %9299 = vmatprep.mubr.f32.mxu1 %v11248_v8  ;;  %v11258_v18 = vand.u32 4294901760, %v2966_v16 }
 0x133   : > { %v11264_v20 = vsub.f32 %v2966_v16, %v11258_v18 }
 0x134   : > { %9293 = vmatmul.mubr.f32.vlgmr.msra.gmra.mrb[0].mxu0 %v11072_v15  ;;  %v2458_v15 = vsel %vm431_vm0, %v419_v12, 0 }
 0x135   : > { %9383 = vmatprep.mubr.f32.mxu0 %v11250_v9  ;;  %v11256_v17 = vand.u32 4294901760, %v2458_v15  ;;  %v11270_v23 = vand.u32 4294901760, %v11264_v20 }
 0x137   : > { %v11261_v19 = vsub.f32 %v2458_v15, %v11256_v17  ;;  %v3048_v30 = vsub.f32 %v11264_v20, %v11270_v23  ;;  %v8740_v15 = vld [vmem:[%s11046_s8] sm:$0xff]  }
 0x139   : > { %v11267_v21 = vand.u32 4294901760, %v11261_v19  ;;  %v11282_v46 = vand.u32 4294901760, %v3048_v30  ;;  %v8727_v30 = vld [vmem:[%s11039_s23 + $0x18] sm:$0xff] }
 0x13b   : > { %v2540_v28 = vsub.f32 %v11261_v19, %v11267_v21 }
 0x13d   : > { %v11278_v39 = vand.u32 4294901760, %v2540_v28 }
 0x1d7   : > { %v9168_v10 = vpop.f32.mrb[0].mxu1 }
 0x1d8   : > { %v930_v11 = vpop.f32.mrb[1].mxu1 }
 0x203   : > { %v9210_v22 = vpop.f32.mrb[2].mxu1 }
 0x204   : > { %v1951_v24 = vsub.f32 %v9168_v10, %v9210_v22  ;;  %v1438_v25 = vpop.f32.mrb[3].mxu1  ;;  %v4481_v22 = vld [vmem:[%s11039_s23 + $0x8] sm:$0xff] }
 0x205   : > { %v1950_v26 = vsub.f32 %v930_v11, %v1438_v25  ;;  %v8742_v25 = vunpack.c.h.bf16 %v8740_v15 }
 0x206   : > { %v2464_v27 = vand.u32 4294901760, %v1951_v24 }
 0x207   : > { %v2461_v29 = vand.u32 4294901760, %v1950_v26  ;;  %v9294_v32 = vpop.f32.mrb[0].mxu0 }
 0x208   : > { %v2556_v31 = vsub.f32 %v1951_v24, %v2464_v27  ;;  %v2972_v35 = vand.u32 4294901760, %v9294_v32  ;;  %v2444_v36 = vpop.f32.mrb[1].mxu0 }
 0x209   : > { %v11276_v33 = vpack.c.bf16 %v2464_v27, %v2461_v29  ;;  %v2549_v34 = vsub.f32 %v1950_v26, %v2461_v29  ;;  %v2969_v38 = vand.u32 4294901760, %v2444_v36  ;;  %v4480_v27 = vld [vmem:[%s11039_s23] sm:$0xff]  ;;  %v8741_v29 = vunpack.c.l.bf16 %v8740_v15 }
 0x20a   : > { %v2557_v37 = vand.u32 4294901760, %v2556_v31  ;;  %v3064_v45 = vsub.f32 %v9294_v32, %v2972_v35  ;;  %v8726_v32 = vld [vmem:[%s11039_s23 + $0x10] sm:$0xff] }
 0x20b   : > { %v2550_v40 = vand.u32 4294901760, %v2549_v34  ;;  %v9903_v44 = vpack.c.bf16 %v2556_v31, %v2549_v34  ;;  %9896 = vmatprep.subr.bf16.mxu1 %v11276_v33  ;;  %9944 = vmatprep.subr.bf16.mxu0 %v11276_v33  ;;  %v11284_v48 = vpack.c.bf16 %v2972_v35, %v2969_v38  ;;  %v3057_v49 = vsub.f32 %v2444_v36, %v2969_v38 }
 0x20c   : > { %v2558_v47 = vsub.f32 %v2556_v31, %v2557_v37  ;;  %9898 = vmatpush3.bf16.msra.mxu1 %v11276_v33  ;;  %9946 = vmatpush3.bf16.msra.mxu0 %v11276_v33  ;;  %v3065_v51 = vand.u32 4294901760, %v3064_v45 }
 0x20d   : > { %v2551_v50 = vsub.f32 %v2549_v34, %v2550_v40  ;;  %v9911_v53 = vpack.c.bf16 %v2557_v37, %v2550_v40  ;;  %v3058_v55 = vand.u32 4294901760, %v3057_v49  ;;  %v11288_v56 = vpack.c.bf16 %v3064_v45, %v3057_v49 }
 0x20e   : > { %v2559_v54 = vand.u32 4294901760, %v2558_v47  ;;  %v3066_v61 = vsub.f32 %v3064_v45, %v3065_v51 }
 0x20f   : > { %v2552_v60 = vand.u32 4294901760, %v2551_v50  ;;  %9300 = vmatmul.mubr.f32.vlgmr.msra.gmra.mrb[4].mxu1 %v11278_v39  ;;  %9384 = vmatmul.mubr.f32.vlgmr.msra.gmra.mrb[2].mxu0 %v11282_v46  ;;  %v3059_v62 = vsub.f32 %v3057_v49, %v3058_v55  ;;  %v11294_v63 = vpack.c.bf16 %v3065_v51, %v3058_v55 }
 0x210   : > { %9306 = vmatprep.mubr.f32.mxu1 %v11228_v0  ;;  %9390 = vmatprep.mubr.f32.mxu0 %v11230_v1  ;;  %v3067_v6 = vand.u32 4294901760, %v3066_v61 }
 0x211   : > { %v9899_v7 = vpack.c.bf16 %v2559_v54, %v2552_v60  ;;  %v3060_v10 = vand.u32 4294901760, %v3059_v62 }
 0x213   : > { %9900 = vmatprep.subr.bf16.mxu1 %v9899_v7  ;;  %9948 = vmatprep.subr.bf16.mxu0 %v9899_v7  ;;  %v9923_v11 = vpack.c.bf16 %v3067_v6, %v3060_v10 }
 0x214   : > { %9902 = vmatpush3.bf16.msra.mxu1 %v9899_v7  ;;  %9950 = vmatpush3.bf16.msra.mxu0 %v9899_v7 }
 0x215   : > { %9904 = vmatprep.subr.bf16.mxu1 %v9903_v44  ;;  %9952 = vmatprep.subr.bf16.mxu0 %v9903_v44 }
 0x217   : > { %9307 = vmatmul.mubr.f32.vlgmr.msra.gmra.mrb[4].mxu1 %v11256_v17  ;;  %9391 = vmatmul.mubr.f32.vlgmr.msra.gmra.mrb[2].mxu0 %v11258_v18 }
 0x218   : > { %9906 = vmatpush3.bf16.msra.mxu1 %v9903_v44  ;;  %9954 = vmatpush3.bf16.msra.mxu0 %v9903_v44 }
 0x219   : > { %9908 = vmatprep.subr.bf16.mxu1 %v11276_v33  ;;  %9956 = vmatprep.subr.bf16.mxu0 %v11276_v33 }
 0x21a   : > { %9313 = vmatprep.mubr.f32.mxu1 %v11233_v2  ;;  %9397 = vmatprep.mubr.f32.mxu0 %v11236_v3 }
 0x21f   : > { %9314 = vmatmul.mubr.f32.vlgmr.msra.gmra.mrb[4].mxu1 %v11261_v19  ;;  %9398 = vmatmul.mubr.f32.vlgmr.msra.gmra.mrb[2].mxu0 %v11264_v20 }
 0x220   : > { %9910 = vmatpush3.bf16.msra.mxu1 %v11276_v33  ;;  %9958 = vmatpush3.bf16.msra.mxu0 %v11276_v33 }
 0x221   : > { %9912 = vmatprep.subr.bf16.mxu1 %v9911_v53  ;;  %9960 = vmatprep.subr.bf16.mxu0 %v9911_v53 }
 0x222   : > { %9320 = vmatprep.mubr.f32.mxu1 %v11239_v4  ;;  %9404 = vmatprep.mubr.f32.mxu0 %v11242_v5 }
 0x227   : > { %9321 = vmatmul.mubr.f32.vlgmr.msra.gmra.mrb[4].mxu1 %v11267_v21  ;;  %9405 = vmatmul.mubr.f32.vlgmr.msra.gmra.mrb[2].mxu0 %v11270_v23 }
 0x228   : > { %9914 = vmatpush3.bf16.msra.mxu1 %v9911_v53  ;;  %9962 = vmatpush3.bf16.msra.mxu0 %v9911_v53 }
 0x229   : > { %9916 = vmatprep.subr.bf16.mxu1 %v11276_v33  ;;  %9964 = vmatprep.subr.bf16.mxu0 %v11276_v33 }
 0x22a   : > { %9327 = vmatprep.mubr.f32.mxu1 %v11228_v0  ;;  %9411 = vmatprep.mubr.f32.mxu0 %v11230_v1 }
 0x22f   : > { %9328 = vmatmul.mubr.f32.vlgmr.msra.gmra.mrb[4].mxu1 %v11256_v17  ;;  %9412 = vmatmul.mubr.f32.vlgmr.msra.gmra.mrb[2].mxu0 %v11258_v18 }
 0x230   : > { %9918 = vmatpush3.bf16.msra.mxu1 %v11276_v33  ;;  %9966 = vmatpush3.bf16.msra.mxu0 %v11276_v33 }
 0x231   : > { %9920 = vmatprep.subr.bf16.mxu1 %v11284_v48  ;;  %9968 = vmatprep.subr.bf16.mxu0 %v11284_v48 }
 0x232   : > { %9334 = vmatprep.mubr.f32.mxu1 %v11228_v0  ;;  %9418 = vmatprep.mubr.f32.mxu0 %v11230_v1 }
 0x237   : > { %9335 = vmatmul.mubr.f32.vlgmr.msra.gmra.mrb[4].mxu1 %v11256_v17  ;;  %9419 = vmatmul.mubr.f32.vlgmr.msra.gmra.mrb[2].mxu0 %v11258_v18 }
 0x238   : > { %9922 = vmatpush3.bf16.msra.mxu1 %v11284_v48  ;;  %9970 = vmatpush3.bf16.msra.mxu0 %v11284_v48 }
 0x239   : > { %9924 = vmatprep.subr.bf16.mxu1 %v9923_v11  ;;  %9972 = vmatprep.subr.bf16.mxu0 %v9923_v11 }
 0x23a   : > { %9341 = vmatprep.mubr.f32.mxu1 %v11250_v9  ;;  %9425 = vmatprep.mubr.f32.mxu0 %v11248_v8 }
 0x23b   : > { %9342 = vmatmul.mubr.f32.vlgmr.msra.gmra.mrb[6].mxu1 %v11282_v46 }
 0x23c   : > { %9926 = vmatpush3.bf16.msra.mxu1 %v9923_v11  ;;  %9348 = vmatprep.mubr.f32.mxu1 %v11230_v1 }
 0x23d   : > { %9928 = vmatprep.subr.bf16.mxu1 %v11288_v56 }
 0x23f   : > { %9426 = vmatmul.mubr.f32.vlgmr.msra.gmra.mrb[2].mxu0 %v11278_v39 }
 0x240   : > { %9974 = vmatpush3.bf16.msra.mxu0 %v9923_v11  ;;  %9432 = vmatprep.mubr.f32.mxu0 %v11228_v0 }
 0x241   : > { %9976 = vmatprep.subr.bf16.mxu0 %v11288_v56 }
 0x243   : > { %9349 = vmatmul.mubr.f32.vlgmr.msra.gmra.mrb[6].mxu1 %v11258_v18 }
 0x244   : > { %9930 = vmatpush3.bf16.msra.mxu1 %v11288_v56  ;;  %9355 = vmatprep.mubr.f32.mxu1 %v11236_v3 }
 0x245   : > { %9932 = vmatprep.subr.bf16.mxu1 %v11284_v48 }
 0x247   : > { %9433 = vmatmul.mubr.f32.vlgmr.msra.gmra.mrb[2].mxu0 %v11256_v17 }
 0x248   : > { %9978 = vmatpush3.bf16.msra.mxu0 %v11288_v56  ;;  %9439 = vmatprep.mubr.f32.mxu0 %v11233_v2 }
 0x249   : > { %9980 = vmatprep.subr.bf16.mxu0 %v11284_v48 }
 0x24b   : > { %9356 = vmatmul.mubr.f32.vlgmr.msra.gmra.mrb[6].mxu1 %v11264_v20 }
 0x24c   : > { %9934 = vmatpush3.bf16.msra.mxu1 %v11284_v48  ;;  %9362 = vmatprep.mubr.f32.mxu1 %v11242_v5 }
 0x24d   : > { %9936 = vmatprep.subr.bf16.mxu1 %v11294_v63 }
 0x24f   : > { %9440 = vmatmul.mubr.f32.vlgmr.msra.gmra.mrb[2].mxu0 %v11261_v19 }
 0x250   : > { %9982 = vmatpush3.bf16.msra.mxu0 %v11284_v48  ;;  %9446 = vmatprep.mubr.f32.mxu0 %v11239_v4 }
 0x251   : > { %9984 = vmatprep.subr.bf16.mxu0 %v11294_v63 }
 0x253   : > { %9363 = vmatmul.mubr.f32.vlgmr.msra.gmra.mrb[6].mxu1 %v11270_v23 }
 0x254   : > { %9938 = vmatpush3.bf16.msra.mxu1 %v11294_v63  ;;  %9369 = vmatprep.mubr.f32.mxu1 %v11230_v1 }
 0x255   : > { %9940 = vmatprep.subr.bf16.mxu1 %v11284_v48 }
 0x257   : > { %9447 = vmatmul.mubr.f32.vlgmr.msra.gmra.mrb[2].mxu0 %v11267_v21 }
 0x258   : > { %9986 = vmatpush3.bf16.msra.mxu0 %v11294_v63  ;;  %9453 = vmatprep.mubr.f32.mxu0 %v11228_v0 }
 0x259   : > { %9988 = vmatprep.subr.bf16.mxu0 %v11284_v48 }
 0x25b   : > { %9370 = vmatmul.mubr.f32.vlgmr.msra.gmra.mrb[6].mxu1 %v11258_v18 }
 0x25c   : > { %9942 = vmatpush3.bf16.msra.mxu1 %v11284_v48  ;;  %9376 = vmatprep.mubr.f32.mxu1 %v11230_v1 }
 0x25f   : > { %9454 = vmatmul.mubr.f32.vlgmr.msra.gmra.mrb[2].mxu0 %v11256_v17 }
 0x260   : > { %9990 = vmatpush3.bf16.msra.mxu0 %v11284_v48  ;;  %9460 = vmatprep.mubr.f32.mxu0 %v11228_v0 }
 0x263   : > { %9377 = vmatmul.mubr.f32.vlgmr.msra.gmra.mrb[6].mxu1 %v11258_v18 }
 0x264   : > { %9467 = vmatprep.mubr.f32.mxu1 %v11250_v9 }
 0x267   : > { %9461 = vmatmul.mubr.f32.vlgmr.msra.gmra.mrb[2].mxu0 %v11256_v17 }
 0x268   : > { %9551 = vmatprep.mubr.f32.mxu0 %v11250_v9 }
 0x30a   : > { %v9336_v12 = vpop.f32.mrb[4].mxu1 }
 0x30b   : > { %v2952_v14 = vpop.f32.mrb[5].mxu1 }
 0x336   : > { %v9378_v16 = vpop.f32.mrb[6].mxu1 }
 0x337   : > { %v3973_v24 = vsub.f32 %v9336_v12, %v9378_v16  ;;  %v3460_v26 = vpop.f32.mrb[7].mxu1 }
 0x338   : > { %v3972_v28 = vsub.f32 %v2952_v14, %v3460_v26 }
 0x339   : > { %v4486_v31 = vsub.f32 %v4481_v22, %v3973_v24 }
 0x33a   : > { %v4485_v33 = vsub.f32 %v4480_v27, %v3972_v28  ;;  %v9462_v34 = vpop.f32.mrb[2].mxu0 }
 0x33b   : > { %v4488_v35 = vmul.f32 %v8742_v25, %v4486_v31  ;;  %v4492_v36 = vsub.f32 %v8727_v30, %v9462_v34  ;;  %v4466_v37 = vpop.f32.mrb[3].mxu0 }
 0x33c   : > { %v4487_v9 = vmul.f32 %v8741_v29, %v4485_v33  ;;  %v4491_v38 = vsub.f32 %v8726_v32, %v4466_v37 }
 0x33d   : > { %v4490_v40 = vadd.f32 %v4488_v35, %v3973_v24  ;;  %v4494_v44 = vmul.f32 %v8742_v25, %v4492_v36 }
 0x33e   : > { %v4489_v45 = vadd.f32 %v4487_v9, %v3972_v28  ;;  %v4493_v47 = vmul.f32 %v8741_v29, %v4491_v38 }
 0x33f   : > { %v5505_v48 = vand.u32 4294901760, %v4490_v40  ;;  %v4496_v49 = vadd.f32 %v9462_v34, %v4494_v44 }
 0x340   : > { %v5502_v50 = vand.u32 4294901760, %v4489_v45  ;;  %v4495_v51 = vadd.f32 %v4493_v47, %v4466_v37 }
 0x341   : > { %v5597_v53 = vsub.f32 %v4490_v40, %v5505_v48  ;;  %v4501_v54 = vand.u32 4294901760, %v4496_v49 }
 0x342   : > { %v11373_v55 = vpack.c.bf16 %v5505_v48, %v5502_v50  ;;  %v5590_v56 = vsub.f32 %v4489_v45, %v5502_v50  ;;  %v4498_v60 = vand.u32 4294901760, %v4495_v51 }
 0x343   : > { %v5598_v61 = vand.u32 4294901760, %v5597_v53  ;;  %v4593_v62 = vsub.f32 %v4496_v49, %v4501_v54 }
 0x344   : > { %v5591_v63 = vand.u32 4294901760, %v5590_v56  ;;  %v11375_v6 = vpack.c.bf16 %v4501_v54, %v4498_v60  ;;  %v4586_v7 = vsub.f32 %v4495_v51, %v4498_v60  ;;  %10040 = vmatprep.subr.bf16.mxu0 %v11373_v55  ;;  %v11378_v10 = vpack.c.bf16 %v5597_v53, %v5590_v56 }
 0x345   : > { %v5599_v11 = vsub.f32 %v5597_v53, %v5598_v61  ;;  %v4594_v12 = vand.u32 4294901760, %v4593_v62  ;;  %10042 = vmatpush3.bf16.msra.mxu0 %v11373_v55 }
 0x346   : > { %v5592_v14 = vsub.f32 %v5590_v56, %v5591_v63  ;;  %v4587_v15 = vand.u32 4294901760, %v4586_v7  ;;  %9992 = vmatprep.subr.bf16.mxu1 %v11375_v6  ;;  %v11382_v16 = vpack.c.bf16 %v4593_v62, %v4586_v7  ;;  %v11384_v22 = vpack.c.bf16 %v5598_v61, %v5591_v63 }
 0x347   : > { %v4595_v24 = vsub.f32 %v4593_v62, %v4594_v12  ;;  %9994 = vmatpush3.bf16.msra.mxu1 %v11375_v6  ;;  %v5600_v25 = vand.u32 4294901760, %v5599_v11 }
 0x348   : > { %v4588_v26 = vsub.f32 %v4586_v7, %v4587_v15  ;;  %9552 = vmatmul.mubr.f32.vlgmr.msra.gmra.mrb[4].mxu0 %v11282_v46  ;;  %v5593_v27 = vand.u32 4294901760, %v5592_v14  ;;  %v11388_v28 = vpack.c.bf16 %v4594_v12, %v4587_v15 }
 0x349   : > { %v4596_v29 = vand.u32 4294901760, %v4595_v24  ;;  %9558 = vmatprep.mubr.f32.mxu0 %v11230_v1 }
 0x34a   : > { %v4589_v30 = vand.u32 4294901760, %v4588_v26  ;;  %9468 = vmatmul.mubr.f32.vlgmr.msra.gmra.mrb[8].mxu1 %v11282_v46  ;;  %v11392_v31 = vpack.c.bf16 %v5600_v25, %v5593_v27 }
 0x34b   : > { %9474 = vmatprep.mubr.f32.mxu1 %v11230_v1 }
 0x34c   : > { %10044 = vmatprep.subr.bf16.mxu0 %v11392_v31  ;;  %v9995_v32 = vpack.c.bf16 %v4596_v29, %v4589_v30 }
 0x34d   : > { %10046 = vmatpush3.bf16.msra.mxu0 %v11392_v31 }
 0x34e   : > { %9996 = vmatprep.subr.bf16.mxu1 %v9995_v32  ;;  %10048 = vmatprep.subr.bf16.mxu0 %v11378_v10 }
 0x34f   : > { %9998 = vmatpush3.bf16.msra.mxu1 %v9995_v32 }
 0x350   : > { %10000 = vmatprep.subr.bf16.mxu1 %v11382_v16  ;;  %9559 = vmatmul.mubr.f32.vlgmr.msra.gmra.mrb[4].mxu0 %v11258_v18 }
 0x351   : > { %10050 = vmatpush3.bf16.msra.mxu0 %v11378_v10  ;;  %9565 = vmatprep.mubr.f32.mxu0 %v11236_v3 }
 0x352   : > { %9475 = vmatmul.mubr.f32.vlgmr.msra.gmra.mrb[8].mxu1 %v11258_v18  ;;  %10052 = vmatprep.subr.bf16.mxu0 %v11373_v55 }
 0x353   : > { %10002 = vmatpush3.bf16.msra.mxu1 %v11382_v16  ;;  %9481 = vmatprep.mubr.f32.mxu1 %v11236_v3 }
 0x354   : > { %10004 = vmatprep.subr.bf16.mxu1 %v11375_v6 }
 0x358   : > { %9566 = vmatmul.mubr.f32.vlgmr.msra.gmra.mrb[4].mxu0 %v11264_v20 }
 0x359   : > { %10054 = vmatpush3.bf16.msra.mxu0 %v11373_v55  ;;  %9572 = vmatprep.mubr.f32.mxu0 %v11242_v5 }
 0x35a   : > { %10056 = vmatprep.subr.bf16.mxu0 %v11384_v22  ;;  %9482 = vmatmul.mubr.f32.vlgmr.msra.gmra.mrb[8].mxu1 %v11264_v20 }
 0x35b   : > { %10006 = vmatpush3.bf16.msra.mxu1 %v11375_v6  ;;  %9488 = vmatprep.mubr.f32.mxu1 %v11242_v5 }
 0x35c   : > { %10008 = vmatprep.subr.bf16.mxu1 %v11388_v28 }
 0x360   : > { %9573 = vmatmul.mubr.f32.vlgmr.msra.gmra.mrb[4].mxu0 %v11270_v23 }
 0x361   : > { %10058 = vmatpush3.bf16.msra.mxu0 %v11384_v22  ;;  %9579 = vmatprep.mubr.f32.mxu0 %v11230_v1 }
 0x362   : > { %10060 = vmatprep.subr.bf16.mxu0 %v11373_v55  ;;  %9489 = vmatmul.mubr.f32.vlgmr.msra.gmra.mrb[8].mxu1 %v11270_v23 }
 0x363   : > { %10010 = vmatpush3.bf16.msra.mxu1 %v11388_v28  ;;  %9495 = vmatprep.mubr.f32.mxu1 %v11230_v1 }
 0x364   : > { %10012 = vmatprep.subr.bf16.mxu1 %v11375_v6 }
 0x368   : > { %9580 = vmatmul.mubr.f32.vlgmr.msra.gmra.mrb[4].mxu0 %v11258_v18 }
 0x369   : > { %10062 = vmatpush3.bf16.msra.mxu0 %v11373_v55  ;;  %9586 = vmatprep.mubr.f32.mxu0 %v11230_v1 }
 0x36a   : > { %9496 = vmatmul.mubr.f32.vlgmr.msra.gmra.mrb[8].mxu1 %v11258_v18  ;;  %10088 = vmatprep.subr.bf16.mxu0 %v11162_v52 }
 0x36b   : > { %10014 = vmatpush3.bf16.msra.mxu1 %v11375_v6  ;;  %9502 = vmatprep.mubr.f32.mxu1 %v11230_v1 }
 0x36c   : > { %10016 = vmatprep.subr.bf16.mxu1 %v11375_v6 }
 0x370   : > { %9587 = vmatmul.mubr.f32.vlgmr.msra.gmra.mrb[4].mxu0 %v11258_v18 }
 0x371   : > { %10090 = vmatpush3.bf16.msra.mxu0 %v11162_v52 }
 0x372   : > { %9503 = vmatmul.mubr.f32.vlgmr.msra.gmra.mrb[8].mxu1 %v11258_v18  ;;  %10092 = vmatprep.subr.bf16.mxu0 %v11172_v57 }
 0x373   : > { %10018 = vmatpush3.bf16.msra.mxu1 %v11375_v6  ;;  %9509 = vmatprep.mubr.f32.mxu1 %v11248_v8 }
 0x374   : > { %10020 = vmatprep.subr.bf16.mxu1 %v9995_v32 }
 0x376   : > { %9510 = vmatmul.mubr.f32.vlgmr.msra.gmra.mrb[10].mxu1 %v11278_v39 }
 0x377   : > { %10022 = vmatpush3.bf16.msra.mxu1 %v9995_v32  ;;  %9516 = vmatprep.mubr.f32.mxu1 %v11228_v0 }
 0x378   : > { %10024 = vmatprep.subr.bf16.mxu1 %v11382_v16 }
 0x37e   : > { %9517 = vmatmul.mubr.f32.vlgmr.msra.gmra.mrb[10].mxu1 %v11256_v17 }
 0x37f   : > { %10026 = vmatpush3.bf16.msra.mxu1 %v11382_v16  ;;  %9523 = vmatprep.mubr.f32.mxu1 %v11233_v2 }
 0x380   : > { %10028 = vmatprep.subr.bf16.mxu1 %v11375_v6 }
 0x386   : > { %9524 = vmatmul.mubr.f32.vlgmr.msra.gmra.mrb[10].mxu1 %v11261_v19 }
 0x387   : > { %10030 = vmatpush3.bf16.msra.mxu1 %v11375_v6  ;;  %9530 = vmatprep.mubr.f32.mxu1 %v11239_v4 }
 0x388   : > { %10032 = vmatprep.subr.bf16.mxu1 %v11388_v28 }
 0x38e   : > { %9531 = vmatmul.mubr.f32.vlgmr.msra.gmra.mrb[10].mxu1 %v11267_v21 }
 0x38f   : > { %10034 = vmatpush3.bf16.msra.mxu1 %v11388_v28  ;;  %9537 = vmatprep.mubr.f32.mxu1 %v11228_v0 }
 0x390   : > { %10036 = vmatprep.subr.bf16.mxu1 %v11375_v6 }
 0x396   : > { %9538 = vmatmul.mubr.f32.vlgmr.msra.gmra.mrb[10].mxu1 %v11256_v17 }
 0x397   : > { %10038 = vmatpush3.bf16.msra.mxu1 %v11375_v6  ;;  %9544 = vmatprep.mubr.f32.mxu1 %v11228_v0 }
 0x398   : > { %10064 = vmatprep.subr.bf16.mxu1 %v11373_v55 }
 0x39e   : > { %9545 = vmatmul.mubr.f32.vlgmr.msra.gmra.mrb[10].mxu1 %v11256_v17 }
 0x39f   : > { %10066 = vmatpush3.bf16.msra.mxu1 %v11373_v55  ;;  %9593 = vmatprep.mubr.f32.mxu1 %v11248_v8 }
 0x3a0   : > { %10068 = vmatprep.subr.bf16.mxu1 %v11392_v31 }
 0x3a2   : > { %9594 = vmatmul.mubr.f32.vlgmr.msra.gmra.mrb[8].mxu1 %v11278_v39 }
 0x3a3   : > { %10070 = vmatpush3.bf16.msra.mxu1 %v11392_v31  ;;  %9600 = vmatprep.mubr.f32.mxu1 %v11228_v0 }
 0x3a4   : > { %10072 = vmatprep.subr.bf16.mxu1 %v11378_v10 }
 0x3aa   : > { %9601 = vmatmul.mubr.f32.vlgmr.msra.gmra.mrb[8].mxu1 %v11256_v17 }
 0x3ab   : > { %10074 = vmatpush3.bf16.msra.mxu1 %v11378_v10  ;;  %9607 = vmatprep.mubr.f32.mxu1 %v11233_v2 }
 0x3ac   : > { %10076 = vmatprep.subr.bf16.mxu1 %v11373_v55 }
 0x3b2   : > { %9608 = vmatmul.mubr.f32.vlgmr.msra.gmra.mrb[8].mxu1 %v11261_v19 }
 0x3b3   : > { %10078 = vmatpush3.bf16.msra.mxu1 %v11373_v55  ;;  %9614 = vmatprep.mubr.f32.mxu1 %v11239_v4 }
 0x3b4   : > { %10080 = vmatprep.subr.bf16.mxu1 %v11384_v22 }
 0x3ba   : > { %9615 = vmatmul.mubr.f32.vlgmr.msra.gmra.mrb[8].mxu1 %v11267_v21 }
 0x3bb   : > { %10082 = vmatpush3.bf16.msra.mxu1 %v11384_v22  ;;  %9621 = vmatprep.mubr.f32.mxu1 %v11228_v0 }
 0x3bc   : > { %10084 = vmatprep.subr.bf16.mxu1 %v11373_v55 }
 0x3c2   : > { %9622 = vmatmul.mubr.f32.vlgmr.msra.gmra.mrb[8].mxu1 %v11256_v17 }
 0x3c3   : > { %10086 = vmatpush3.bf16.msra.mxu1 %v11373_v55  ;;  %9628 = vmatprep.mubr.f32.mxu1 %v11228_v0 }
 0x3c4   : > { %10112 = vmatprep.subr.bf16.mxu1 %v11162_v52 }
 0x3ca   : > { %9629 = vmatmul.mubr.f32.vlgmr.msra.gmra.mrb[8].mxu1 %v11256_v17 }
 0x3cb   : > { %10114 = vmatpush3.bf16.msra.mxu1 %v11162_v52 }
 0x3cc   : > { %10116 = vmatprep.subr.bf16.mxu1 %v11172_v57 }
 0x443   : > { %v9588_v1 = vpop.f32.mrb[4].mxu0 }
 0x444   : > { %v5993_v2 = vpop.f32.mrb[5].mxu0 }
 0x471   : > { %v9546_v3 = vpop.f32.mrb[10].mxu1 }
 0x472   : > { %v6506_v4 = vsub.f32 %v9546_v3, %v9588_v1  ;;  %v5491_v5 = vpop.f32.mrb[11].mxu1 }
 0x473   : > { %v6505_v8 = vsub.f32 %v5491_v5, %v5993_v2 }
 0x474   : > { %6510 = vst.msk [vmem:[#allocation3 + $0x8] sm:$0xff] %vm431_vm0, %v6506_v4 }
 0x475   : > { %6509 = vst.msk [vmem:[#allocation3] sm:$0xff] %vm431_vm0, %v6505_v8 }
 0x47b   : > { %v6514_v18 = vld [vmem:[#allocation3 + $0x8] sm:$0xff] }
 0x47c   : > { %v6513_v0 = vld [vmem:[#allocation3] sm:$0xff]  ;;  %v6519_v19 = vsel %vm431_vm0, %v6514_v18, 0 }
 0x47d   : > { %v6516_v17 = vsel %vm431_vm0, %v6513_v0, 0  ;;  %v11487_v20 = vand.u32 4294901760, %v6519_v19 }
 0x47e   : > { %v11489_v21 = vand.u32 4294901760, %v6516_v17 }
 0x47f   : > { %v11492_v23 = vsub.f32 %v6519_v19, %v11487_v20 }
 0x480   : > { %v11495_v39 = vsub.f32 %v6516_v17, %v11489_v21 }
 0x481   : > { %v11498_v46 = vand.u32 4294901760, %v11492_v23 }
 0x482   : > { %v11501_v33 = vand.u32 4294901760, %v11495_v39 }
 0x483   : > { %v6601_v34 = vsub.f32 %v11492_v23, %v11498_v46 }
 0x484   : > { %v6591_v35 = vsub.f32 %v11495_v39, %v11501_v33 }
 0x485   : > { %v6602_v37 = vand.u32 4294901760, %v6601_v34 }
 0x486   : > { %v6592_v36 = vand.u32 4294901760, %v6591_v35 }
 0x488   : > { %9635 = vmatprep.mubr.f32.mxu0 %v6592_v36 }
 0x489   : > { %9636 = vmatmul.mubr.f32.vlgmr.msra.gmra.mrb[6].mxu0 %v6602_v37 }
 0x48a   : > { %9642 = vmatprep.mubr.f32.mxu0 %v11489_v21  ;;  %10094 = vmatpush3.bf16.msra.mxu0 %v11172_v57 }
 0x48b   : > { %10096 = vmatprep.subr.bf16.mxu0 %v11179_v58 }
 0x491   : > { %9643 = vmatmul.mubr.f32.vlgmr.msra.gmra.mrb[6].mxu0 %v11487_v20 }
 0x492   : > { %9649 = vmatprep.mubr.f32.mxu0 %v11495_v39  ;;  %10098 = vmatpush3.bf16.msra.mxu0 %v11179_v58 }
 0x493   : > { %10100 = vmatprep.subr.bf16.mxu0 %v11162_v52 }
 0x499   : > { %9650 = vmatmul.mubr.f32.vlgmr.msra.gmra.mrb[6].mxu0 %v11492_v23 }
 0x49a   : > { %9656 = vmatprep.mubr.f32.mxu0 %v11501_v33  ;;  %10102 = vmatpush3.bf16.msra.mxu0 %v11162_v52 }
 0x49b   : > { %10104 = vmatprep.subr.bf16.mxu0 %v11199_v59 }
 0x49d   : > { %v9630_v9 = vpop.f32.mrb[8].mxu1 }
 0x49e   : > { %6508 = vst.msk [vmem:[#allocation2 + $0x8] sm:$0xff] %vm431_vm0, %v9630_v9  ;;  %v6495_v38 = vpop.f32.mrb[9].mxu1 }
 0x49f   : > { %6507 = vst.msk [vmem:[#allocation2] sm:$0xff] %vm431_vm0, %v6495_v38 }
 0x4a1   : > { %9657 = vmatmul.mubr.f32.vlgmr.msra.gmra.mrb[6].mxu0 %v11498_v46 }
 0x4a2   : > { %9663 = vmatprep.mubr.f32.mxu0 %v11489_v21  ;;  %10106 = vmatpush3.bf16.msra.mxu0 %v11199_v59 }
 0x4a3   : > { %10108 = vmatprep.subr.bf16.mxu0 %v11162_v52 }
 0x4a5   : > { %v6512_v40 = vld [vmem:[#allocation2 + $0x8] sm:$0xff] }
 0x4a6   : > { %v6511_v44 = vld [vmem:[#allocation2] sm:$0xff]  ;;  %v7027_v45 = vsel %vm431_vm0, %v6512_v40, 0 }
 0x4a7   : > { %v7024_v47 = vsel %vm431_vm0, %v6511_v44, 0  ;;  %v11526_v48 = vand.u32 4294901760, %v7027_v45 }
 0x4a8   : > { %v11528_v49 = vand.u32 4294901760, %v7024_v47 }
 0x4a9   : > { %9664 = vmatmul.mubr.f32.vlgmr.msra.gmra.mrb[6].mxu0 %v11487_v20  ;;  %v11532_v50 = vsub.f32 %v7027_v45, %v11526_v48 }
 0x4aa   : > { %9670 = vmatprep.mubr.f32.mxu0 %v11489_v21  ;;  %10110 = vmatpush3.bf16.msra.mxu0 %v11162_v52  ;;  %v7097_v51 = vsub.f32 %v7024_v47, %v11528_v49 }
 0x4ab   : > { %10136 = vmatprep.subr.bf16.mxu0 %v11068_v13  ;;  %v11539_v53 = vand.u32 4294901760, %v11532_v50 }
 0x4ac   : > { %v7098_v54 = vand.u32 4294901760, %v7097_v51 }
 0x4ad   : > { %v7109_v55 = vsub.f32 %v11532_v50, %v11539_v53 }
 0x4ae   : > { %v7099_v56 = vsub.f32 %v7097_v51, %v7098_v54 }
 0x4af   : > { %v7110_v61 = vand.u32 4294901760, %v7109_v55 }
 0x4b0   : > { %v7100_v60 = vand.u32 4294901760, %v7099_v56 }
 0x4b1   : > { %9671 = vmatmul.mubr.f32.vlgmr.msra.gmra.mrb[6].mxu0 %v11487_v20 }
 0x4b2   : > { %9677 = vmatprep.mubr.f32.mxu1 %v7100_v60  ;;  %10138 = vmatpush3.bf16.msra.mxu0 %v11068_v13 }
 0x4b3   : > { %9719 = vmatprep.mubr.f32.mxu0 %v6592_v36  ;;  %9678 = vmatmul.mubr.f32.vlgmr.msra.gmra.mrb[12].mxu1 %v7110_v61 }
 0x4b4   : > { %9684 = vmatprep.mubr.f32.mxu1 %v11528_v49  ;;  %10118 = vmatpush3.bf16.msra.mxu1 %v11172_v57 }
 0x4b5   : > { %9720 = vmatmul.mubr.f32.vlgmr.msra.gmra.mrb[8].mxu0 %v6602_v37  ;;  %10140 = vmatprep.subr.bf16.mxu0 %v11121_v41 }
 0x4b6   : > { %9726 = vmatprep.mubr.f32.mxu0 %v11489_v21  ;;  %10142 = vmatpush3.bf16.msra.mxu0 %v11121_v41 }
 0x4b7   : > { %10120 = vmatprep.subr.bf16.mxu1 %v11179_v58  ;;  %10144 = vmatprep.subr.bf16.mxu0 %v11125_v42 }
 0x4bb   : > { %9685 = vmatmul.mubr.f32.vlgmr.msra.gmra.mrb[12].mxu1 %v11526_v48 }
 0x4bc   : > { %9691 = vmatprep.mubr.f32.mxu1 %v7097_v51  ;;  %10122 = vmatpush3.bf16.msra.mxu1 %v11179_v58 }
 0x4bd   : > { %9727 = vmatmul.mubr.f32.vlgmr.msra.gmra.mrb[8].mxu0 %v11487_v20  ;;  %10124 = vmatprep.subr.bf16.mxu1 %v11162_v52 }
 0x4be   : > { %9733 = vmatprep.mubr.f32.mxu0 %v11495_v39  ;;  %10146 = vmatpush3.bf16.msra.mxu0 %v11125_v42 }
 0x4bf   : > { %10148 = vmatprep.subr.bf16.mxu0 %v11068_v13 }
 0x4c3   : > { %9692 = vmatmul.mubr.f32.vlgmr.msra.gmra.mrb[12].mxu1 %v11532_v50 }
 0x4c4   : > { %9698 = vmatprep.mubr.f32.mxu1 %v7098_v54  ;;  %10126 = vmatpush3.bf16.msra.mxu1 %v11162_v52 }
 0x4c5   : > { %9734 = vmatmul.mubr.f32.vlgmr.msra.gmra.mrb[8].mxu0 %v11492_v23  ;;  %10128 = vmatprep.subr.bf16.mxu1 %v11199_v59 }
 0x4c6   : > { %9740 = vmatprep.mubr.f32.mxu0 %v11501_v33  ;;  %10150 = vmatpush3.bf16.msra.mxu0 %v11068_v13 }
 0x4c7   : > { %10152 = vmatprep.subr.bf16.mxu0 %v11144_v43 }
 0x4cb   : > { %9699 = vmatmul.mubr.f32.vlgmr.msra.gmra.mrb[12].mxu1 %v11539_v53 }
 0x4cc   : > { %9705 = vmatprep.mubr.f32.mxu1 %v11528_v49  ;;  %10130 = vmatpush3.bf16.msra.mxu1 %v11199_v59 }
 0x4cd   : > { %9741 = vmatmul.mubr.f32.vlgmr.msra.gmra.mrb[8].mxu0 %v11498_v46  ;;  %10132 = vmatprep.subr.bf16.mxu1 %v11162_v52 }
 0x4ce   : > { %9747 = vmatprep.mubr.f32.mxu0 %v11489_v21  ;;  %10154 = vmatpush3.bf16.msra.mxu0 %v11144_v43 }
 0x4cf   : > { %10156 = vmatprep.subr.bf16.mxu0 %v11068_v13 }
 0x4d3   : > { %9706 = vmatmul.mubr.f32.vlgmr.msra.gmra.mrb[12].mxu1 %v11526_v48 }
 0x4d4   : > { %9712 = vmatprep.mubr.f32.mxu1 %v11528_v49  ;;  %10134 = vmatpush3.bf16.msra.mxu1 %v11162_v52 }
 0x4d5   : > { %9748 = vmatmul.mubr.f32.vlgmr.msra.gmra.mrb[8].mxu0 %v11487_v20 }
 0x4d6   : > { %9754 = vmatprep.mubr.f32.mxu0 %v11489_v21  ;;  %10158 = vmatpush3.bf16.msra.mxu0 %v11068_v13 }
 0x4d7   : > { %10160 = vmatprep.subr.bf16.mxu0 %v11068_v13 }
 0x4db   : > { %9713 = vmatmul.mubr.f32.vlgmr.msra.gmra.mrb[12].mxu1 %v11526_v48 }
 0x4dd   : > { %9755 = vmatmul.mubr.f32.vlgmr.msra.gmra.mrb[8].mxu0 %v11487_v20 }
 0x4de   : > { %10162 = vmatpush3.bf16.msra.mxu0 %v11068_v13  ;;  %9761 = vmatprep.mubr.f32.mxu0 %v7100_v60 }
 0x4df   : > { %10164 = vmatprep.subr.bf16.mxu0 %v11121_v41 }
 0x4e1   : > { %9762 = vmatmul.mubr.f32.vlgmr.msra.gmra.mrb[6].mxu0 %v7110_v61 }
 0x4e2   : > { %9768 = vmatprep.mubr.f32.mxu0 %v11528_v49  ;;  %10166 = vmatpush3.bf16.msra.mxu0 %v11121_v41 }
 0x4e3   : > { %10168 = vmatprep.subr.bf16.mxu0 %v11125_v42 }
 0x4e9   : > { %9769 = vmatmul.mubr.f32.vlgmr.msra.gmra.mrb[6].mxu0 %v11526_v48 }
 0x4ea   : > { %9775 = vmatprep.mubr.f32.mxu0 %v7097_v51  ;;  %10170 = vmatpush3.bf16.msra.mxu0 %v11125_v42 }
 0x4eb   : > { %10172 = vmatprep.subr.bf16.mxu0 %v11068_v13 }
 0x4f1   : > { %9776 = vmatmul.mubr.f32.vlgmr.msra.gmra.mrb[6].mxu0 %v11532_v50 }
 0x4f2   : > { %9782 = vmatprep.mubr.f32.mxu0 %v7098_v54  ;;  %10174 = vmatpush3.bf16.msra.mxu0 %v11068_v13 }
 0x4f3   : > { %10176 = vmatprep.subr.bf16.mxu0 %v11144_v43 }
 0x4f9   : > { %9783 = vmatmul.mubr.f32.vlgmr.msra.gmra.mrb[6].mxu0 %v11539_v53 }
 0x4fa   : > { %9789 = vmatprep.mubr.f32.mxu0 %v11528_v49  ;;  %10178 = vmatpush3.bf16.msra.mxu0 %v11144_v43 }
 0x4fb   : > { %10180 = vmatprep.subr.bf16.mxu0 %v11068_v13 }
 0x501   : > { %9790 = vmatmul.mubr.f32.vlgmr.msra.gmra.mrb[6].mxu0 %v11526_v48 }
 0x502   : > { %9796 = vmatprep.mubr.f32.mxu0 %v11528_v49  ;;  %10182 = vmatpush3.bf16.msra.mxu0 %v11068_v13 }
 0x509   : > { %9797 = vmatmul.mubr.f32.vlgmr.msra.gmra.mrb[6].mxu0 %v11526_v48 }
 0x5ae   : > { %v9714_v41 = vpop.f32.mrb[12].mxu1 }
 0x5af   : > { %v7521_v42 = vpop.f32.mrb[13].mxu1 }
 0x5b0   : > { %v9756_v52 = vpop.f32.mrb[8].mxu0 }
 0x5b1   : > { %v8536_v57 = vsub.f32 %v9756_v52, %v9714_v41  ;;  %v8023_v58 = vpop.f32.mrb[9].mxu0 }
 0x5b2   : > { %v8535_v59 = vsub.f32 %v8023_v58, %v7521_v42 }
 0x5b3   : > { %8729 = vst.msk [vmem:[%s417_s29 + $0x18] sm:$0xff] %vm431_vm0, %v8536_v57 }
 0x5b4   : > { %8728 = vst.msk [vmem:[%s417_s29 + $0x10] sm:$0xff] %vm431_vm0, %v8535_v59 }
 0x5dc   : > { %v9798_v13 = vpop.f32.mrb[6].mxu0 }
 0x5dd   : > { %8538 = vst.msk [vmem:[%s417_s29 + $0x8] sm:$0xff] %vm431_vm0, %v9798_v13  ;;  %v8525_v43 = vpop.f32.mrb[7].mxu0 }
 0x5de   : > { %8537 = vst.msk [vmem:[%s417_s29] sm:$0xff] %vm431_vm0, %v8525_v43 }
 0x5df   : > { %10631 = shalt.err (!%p10628_p5)
}
 0x5e0   : > { %s10632_s21 = scalar_lea.hbm %s11611_s3, 512  ;;  %s10636_s23 = scalar_lea.hbm %s11725_s9, 1024 }
 0x5e1   : > { %p10633_p8 = scmp.ne.s32.totalorder %s11611_s3, %s10632_s21  ;;  %p10637_p11 = scmp.lt.u32.totalorder %s11611_s3, %s11725_s9 }
 0x5e2   : > { %p10638_p13 = scmp.lt.u32.totalorder %s10636_s23, %s10632_s21  ;;  %p10640_p7 = scmp.lt.u32.totalorder %s10632_s21, %s11611_s3 }
 0x5e3   : > { %p10634_p1 = pnand %p10633_p8, %p11726_p12 }
 0x5e4   : > { %p10639_p3 = por %p10638_p13, %p10637_p11 }
 0x5e5   : > { %p10635_p0 = pneg %p10634_p1 }
 0x5e6   : > { %p10641_p2 = por %p10640_p7, %p10639_p3 }
 0x5e8   : > { %p10642_p6 = pnand %p10641_p2, %p10635_p0 }
 0x5ea   : > { %10645 = shalt.err (!%p10642_p6)
}
 0x5eb   : > { %s10709_s17 = smov 128   ;;  %s10710_s12 = smov 8  }
 0x5ec   : > { %10369 = dma.vmem_to_hbm [thread:$0]  (%p11726_p12), %s11606_s24, 512, %s11611_s3, %s8543_s7, %s10709_s17, %s10709_s17, %s10710_s12  }
 0x5ed PF: > { %s11727_s30 = sld [smem:[#allocation21_spill]]  ;;  %s11728_s10 = sld [smem:[#allocation26_spill]] }
 0x5ee   : > { %p11730_p10 = scmp.ge.s32.totalorder %s10696_s27, 2 }
 0x5f3   : > { %s8571_s29 = sand.u32 1, %s11727_s30   ;;  %p11729_p9 = scmp.ne.s32.totalorder %s11728_s10, 0 }
 0x5f4   : > { %s8572_s11 = scalar_lea.sflag [#allocation6], %s8571_s29 }
 0x5f5   : > { %p10392_p4 = pnand %p11730_p10, %p11729_p9 }
 0x5f7   : > { %10679 = dma.done.wait (!%p10392_p4), %s8572_s11, 512  }
 0x5f8   : > { %10681 = vsyncadd (!%p10392_p4), %s8572_s11, 4294966784  ;;  %s11731_s27 = sld [smem:[#allocation23_spill]]  ;;  %s11732_s14 = sld [smem:[#allocation22_spill]] }
 0x5f9   : > { %s11733_s26 = sld [smem:[#allocation24_spill]]  ;;  %s11734_s24 = smov %s10688_s25 }
 0x5fe   : > { %p25_p5 = scmp.ge.s32.totalorder %s11731_s27, 4   ;;  %s11735_s25 = smov %s11732_s14 }
 0x600   :  { %27 = sbr.rel (!%p25_p5) target bundleno = 13 (0xd), region = 132 }
 0x607   :  { %8577 = vsyncpa [#allocation5], 1 }
 0x608   :  { %8579 = vsyncpa [#allocation5 + $0x1], 1 }
 0x609   :  { %8580 = vsyncpa [#allocation8], 1 }
 0x60a   :  { %8582 = vsyncpa [#allocation8 + $0x1], 1 }
 0x60b   :  { %8583 = vsyncpa [#allocation11], 1 }
 0x60c   :  { %8584 = vsyncpa [#allocation14], 1 }
 0x60d   :  { %8585 = vsyncpa [#allocation6], 1 }
 0x60e   :  { %8587 = vsyncpa [#allocation6 + $0x1], 1 }

</bundles_post_ra>
